<compile_context>
chip_gen: v5e
topology: v5e:2x2
jax: 0.10.0
libtpu: 0.0.40
codegen_flags: <defaults>
</compile_context>

<pallas_src>
import functools

import jax
import jax.numpy as jnp
from jax.experimental import pallas as pl
from jax.experimental.pallas import tpu as pltpu


# ---------------------------------------------------------------------------
# Fused Pallas kernel: multi-hot fused-W1 gather + block-diag srv/sfc/vnf MLP
# + rack one-hot embedding + core MLP, all in a single grid-less invocation.
# ---------------------------------------------------------------------------
def _state_encoder_kernel(
    ids_ref, cont_ref, w1_ids_ref, w1_cont_ref, w2_ref,
    rack_emb_ref, core_w1_ref, core_w2_ref, bias_ref,
    o_ref, *,
    t_pad, n_rack, n_srv, n_sfc, n_vnf, v_tot,
    hidden, srv_out, sfc_out, vnf_out, rack_id, core_out):

  h3 = 3 * hidden
  out3 = srv_out + sfc_out + vnf_out
  r_srv = n_srv * t_pad
  r_sfc = n_sfc * t_pad
  r_vnf = n_vnf * t_pad
  r_ent = r_srv + r_sfc + r_vnf

  bias = bias_ref[...]                       # (4, >=3H) packed bias slab
  b1 = bias[0:1, 0:h3]                       # block-diag first-layer bias
  b2 = bias[1:2, 0:out3]                     # block-diag second-layer bias
  cb1 = bias[2:3, 0:hidden]                  # core layer-1 bias
  cb2 = bias[3:4, 0:core_out]                # core layer-2 bias

  # ---- fused block-diagonal srv | sfc | vnf encoders -----------------------
  # Multi-hot over the concatenated (globally-offset) vocab: a single bf16
  # MXU matmul replaces all embedding gathers, feature concats and the three
  # first-layer dots.  Padding id value -1 never matches the iota.
  ids = ids_ref[0:r_ent, :]                                        # (Re, 4) i32
  iota_v = jax.lax.broadcasted_iota(jnp.int32, (r_ent, v_tot), 1)
  hot = (ids[:, 0:1] == iota_v) | (ids[:, 1:2] == iota_v)
  hot = hot | (ids[:, 2:3] == iota_v) | (ids[:, 3:4] == iota_v)
  multi_hot = hot.astype(jnp.bfloat16)                             # (Re, V)

  h1 = jnp.dot(multi_hot, w1_ids_ref[...],
               preferred_element_type=jnp.float32)                 # (Re, 3H)
  h1 = h1 + jnp.dot(cont_ref[...].astype(jnp.bfloat16), w1_cont_ref[...],
                    preferred_element_type=jnp.float32)
  h1 = jnp.maximum(h1 + b1, 0.0)                                   # f32 VPU
  y = jnp.dot(h1.astype(jnp.bfloat16), w2_ref[...],
              preferred_element_type=jnp.float32) + b2             # (Re, 24)

  # ---- rack position embeddings (actual output -> standalone bf16 one-hot) -
  rack_ids = ids_ref[r_ent:r_ent + n_rack * t_pad, 0:1]
  iota_r = jax.lax.broadcasted_iota(
      jnp.int32, (n_rack * t_pad, rack_emb_ref.shape[0]), 1)
  rack_e = jnp.dot((rack_ids == iota_r).astype(jnp.bfloat16),
                   rack_emb_ref[...],
                   preferred_element_type=jnp.float32)             # (Rr, rid)

  # entity-major (n*Tp, d) -> token-major (Tp, n*d); sublane-aligned slices.
  def to_lanes(x, row0, n, col0, d):
    return jnp.concatenate(
        [x[row0 + i * t_pad: row0 + (i + 1) * t_pad, col0:col0 + d]
         for i in range(n)], axis=1)

  rack_flat = to_lanes(rack_e, 0, n_rack, 0, rack_id)
  srv_flat = to_lanes(y, 0, n_srv, 0, srv_out)
  sfc_flat = to_lanes(y, r_srv, n_sfc, srv_out, sfc_out)
  vnf_flat = to_lanes(y, r_srv + r_sfc, n_vnf, srv_out + sfc_out, vnf_out)

  # ---- core encoder (core_in built in-register, never round-trips HBM) ----
  core_in = jnp.concatenate([rack_flat, srv_flat, sfc_flat, vnf_flat], axis=1)
  ch = jnp.maximum(
      jnp.dot(core_in.astype(jnp.bfloat16), core_w1_ref[...],
              preferred_element_type=jnp.float32) + cb1, 0.0)
  core_y = jnp.dot(ch.astype(jnp.bfloat16), core_w2_ref[...],
                   preferred_element_type=jnp.float32) + cb2

  # Two direct stores into the 128-multiple-wide output slab (no concat
  # shifting core_y across the non-128 boundary).  Lanes past
  # d_core_in + core_out are never written and never read by the wrapper.
  d_core_in = core_in.shape[1]
  o_ref[:, 0:d_core_in] = core_in
  o_ref[:, d_core_in:d_core_in + core_out] = core_y


# ---------------------------------------------------------------------------
# Parameter construction (deterministic, synthetic) -- unchanged model init
# ---------------------------------------------------------------------------
def init_mlp(key, f_in, hidden, f_out):
  k1, k2, k3, k4 = jax.random.split(key, 4)
  w1 = (jax.random.normal(k1, (f_in, hidden), jnp.float32) * 0.1).astype(jnp.bfloat16)
  b1 = jax.random.normal(k2, (1, hidden), jnp.float32) * 0.01
  w2 = (jax.random.normal(k3, (hidden, f_out), jnp.float32) * 0.1).astype(jnp.bfloat16)
  b2 = jax.random.normal(k4, (1, f_out), jnp.float32) * 0.01
  return (w1, b1, w2, b2)


def init_params(cfg, key):
  keys = jax.random.split(key, 8)
  params = {
      "rack_emb": jax.random.normal(keys[0], (cfg["max_rack"], cfg["rack_id"]), jnp.float32),
      "srv_emb": jax.random.normal(keys[1], (cfg["max_srv"], cfg["srv_id"]), jnp.float32),
      "sfc_emb": jax.random.normal(keys[2], (cfg["max_sfc"], cfg["sfc_id"]), jnp.float32),
      "vnf_emb": jax.random.normal(keys[3], (cfg["max_vnf"], cfg["vnf_id"]), jnp.float32),
  }
  srv_in = 3 + cfg["srv_id"] + cfg["rack_id"]
  sfc_in = 1 + cfg["sfc_id"]
  vnf_in = 3 + cfg["vnf_id"] + cfg["srv_id"] + 2 * cfg["sfc_id"]
  core_in = (cfg["max_rack"] * cfg["rack_id"]
             + cfg["max_srv"] * cfg["srv_out"]
             + cfg["max_sfc"] * cfg["sfc_out"]
             + cfg["max_vnf"] * cfg["vnf_out"])
  params["srv_enc"] = init_mlp(keys[4], srv_in, cfg["hidden"], cfg["srv_out"])
  params["sfc_enc"] = init_mlp(keys[5], sfc_in, cfg["hidden"], cfg["sfc_out"])
  params["vnf_enc"] = init_mlp(keys[6], vnf_in, cfg["hidden"], cfg["vnf_out"])
  params["core_enc"] = init_mlp(keys[7], core_in, cfg["hidden"], cfg["core_out"])
  return params


# ---------------------------------------------------------------------------
# One-time host-side packing: fold embedding tables into W1, build the
# block-diagonal weight slabs and the packed bias slab (review opts #1,#2,#4,#5)
# ---------------------------------------------------------------------------
def prepare_packed_params(params, cfg):
  h = cfg["hidden"]
  srv_id, rack_id = cfg["srv_id"], cfg["rack_id"]
  sfc_id, vnf_id = cfg["sfc_id"], cfg["vnf_id"]
  so, fo, vo, co = cfg["srv_out"], cfg["sfc_out"], cfg["vnf_out"], cfg["core_out"]

  srv_w1, srv_b1, srv_w2, srv_b2 = params["srv_enc"]
  sfc_w1, sfc_b1, sfc_w2, sfc_b2 = params["sfc_enc"]
  vnf_w1, vnf_b1, vnf_w2, vnf_b2 = params["vnf_enc"]
  core_w1, core_b1, core_w2, core_b2 = params["core_enc"]
  rack_t, srv_t = params["rack_emb"], params["srv_emb"]
  sfc_t, vnf_t = params["sfc_emb"], params["vnf_emb"]

  def fold(table, w1_rows):
    # Same rounding the unfused path sees (bf16 table values x bf16 W1 rows,
    # f32 accumulation); stored bf16 for the MXU.
    return (table.astype(jnp.bfloat16).astype(jnp.float32)
            @ w1_rows.astype(jnp.float32))

  # (id-column name, table, W1 row segment, hidden block) for every id column.
  slots = (
      ("srv_srv", srv_t, srv_w1[3:3 + srv_id], 0),
      ("srv_rack", rack_t, srv_w1[3 + srv_id:3 + srv_id + rack_id], 0),
      ("sfc_sfc", sfc_t, sfc_w1[1:1 + sfc_id], 1),
      ("vnf_vnf", vnf_t, vnf_w1[3:3 + vnf_id], 2),
      ("vnf_srv", srv_t, vnf_w1[3 + vnf_id:3 + vnf_id + srv_id], 2),
      ("vnf_sfc", sfc_t, vnf_w1[3 + vnf_id + srv_id:3 + vnf_id + srv_id + sfc_id], 2),
      ("vnf_ord", sfc_t, vnf_w1[3 + vnf_id + srv_id + sfc_id:], 2),
  )
  offsets, v_tot = {}, 0
  for name, table, _, _ in slots:
    offsets[name] = v_tot
    v_tot += table.shape[0]

  w1_ids = jnp.zeros((v_tot, 3 * h), jnp.float32)
  for name, table, w_rows, blk in slots:
    o = offsets[name]
    w1_ids = w1_ids.at[o:o + table.shape[0], blk * h:(blk + 1) * h].set(
        fold(table, w_rows))

  k_srv, k_sfc, k_vnf = 3, 1, 3                  # continuous feature widths
  w1_cont = jnp.zeros((k_srv + k_sfc + k_vnf, 3 * h), jnp.float32)
  w1_cont = w1_cont.at[0:k_srv, 0:h].set(srv_w1[0:k_srv].astype(jnp.float32))
  w1_cont = w1_cont.at[k_srv:k_srv + k_sfc, h:2 * h].set(
      sfc_w1[0:k_sfc].astype(jnp.float32))
  w1_cont = w1_cont.at[k_srv + k_sfc:, 2 * h:3 * h].set(
      vnf_w1[0:k_vnf].astype(jnp.float32))

  out3 = so + fo + vo
  w2_bd = jnp.zeros((3 * h, out3), jnp.float32)
  w2_bd = w2_bd.at[0:h, 0:so].set(srv_w2.astype(jnp.float32))
  w2_bd = w2_bd.at[h:2 * h, so:so + fo].set(sfc_w2.astype(jnp.float32))
  w2_bd = w2_bd.at[2 * h:, so + fo:].set(vnf_w2.astype(jnp.float32))

  bw = max(3 * h, out3, h, co)
  bias = jnp.zeros((4, bw), jnp.float32)
  bias = bias.at[0, 0:h].set(srv_b1[0]).at[0, h:2 * h].set(sfc_b1[0])
  bias = bias.at[0, 2 * h:3 * h].set(vnf_b1[0])
  bias = bias.at[1, 0:so].set(srv_b2[0]).at[1, so:so + fo].set(sfc_b2[0])
  bias = bias.at[1, so + fo:out3].set(vnf_b2[0])
  bias = bias.at[2, 0:h].set(core_b1[0])
  bias = bias.at[3, 0:co].set(core_b2[0])

  packed = dict(
      w1_ids=w1_ids.astype(jnp.bfloat16),
      w1_cont=w1_cont.astype(jnp.bfloat16),
      w2_bd=w2_bd.astype(jnp.bfloat16),
      rack_emb=rack_t.astype(jnp.bfloat16),
      core_w1=core_w1, core_w2=core_w2, bias=bias)
  meta = dict(v_tot=v_tot, vocab_offsets=offsets, hidden=h,
              srv_out=so, sfc_out=fo, vnf_out=vo,
              rack_id=rack_id, core_out=co,
              k_srv=k_srv, k_sfc=k_sfc, k_vnf=k_vnf)
  return packed, meta


# ---------------------------------------------------------------------------
# StateEncoder.forward (single fused pallas_call)
# ---------------------------------------------------------------------------
def state_encoder_forward(packed, meta, rack_x, srv_x, sfc_x, vnf_x):
  B = rack_x.shape[0]
  n_rack, n_srv = rack_x.shape[2], srv_x.shape[2]
  n_sfc, n_vnf = sfc_x.shape[2], vnf_x.shape[2]

  # The module returns only the last timestep of every stream, so only the
  # last step is encoded (identical outputs, 1/seq_len the compute & DMA).
  rack_x, srv_x, sfc_x, vnf_x = (rack_x[:, -1:], srv_x[:, -1:],
                                 sfc_x[:, -1:], vnf_x[:, -1:])
  s_eff = 1
  T = B * s_eff
  T_pad = -(-T // 8) * 8          # sublane multiple for aligned slices

  def pack(x):                    # (B, S, N, F) -> (N * T_pad, F) entity-major
    _, _, N, F = x.shape
    xt = jnp.transpose(x, (2, 0, 1, 3)).reshape(N, T, F)
    if T_pad != T:
      xt = jnp.pad(xt, ((0, 0), (0, T_pad - T), (0, 0)))
    return xt.reshape(N * T_pad, F)

  srv_em, sfc_em = pack(srv_x), pack(sfc_x)
  vnf_em, rack_em = pack(vnf_x), pack(rack_x)

  off = meta["vocab_offsets"]
  k_srv, k_sfc, k_vnf = meta["k_srv"], meta["k_sfc"], meta["k_vnf"]
  ii = lambda a: a.astype(jnp.int32)
  neg1 = lambda r, c: jnp.full((r, c), -1, jnp.int32)
  zf = lambda r, c: jnp.zeros((r, c), jnp.float32)

  # Id columns -> one int32 slab, pre-offset into the fused vocab (unused
  # columns padded with -1, which never matches).  Rack ids ride in the tail.
  ids_all = jnp.concatenate([
      jnp.concatenate([ii(srv_em[:, 0:1]) + off["srv_srv"],
                       ii(srv_em[:, 1:2]) + off["srv_rack"],
                       neg1(n_srv * T_pad, 2)], axis=1),
      jnp.concatenate([ii(sfc_em[:, 0:1]) + off["sfc_sfc"],
                       neg1(n_sfc * T_pad, 3)], axis=1),
      jnp.concatenate([ii(vnf_em[:, 0:1]) + off["vnf_vnf"],
                       ii(vnf_em[:, 1:2]) + off["vnf_srv"],
                       ii(vnf_em[:, 2:3]) + off["vnf_sfc"],
                       ii(vnf_em[:, 3:4]) + off["vnf_ord"]], axis=1),
      jnp.concatenate([ii(rack_em[:, 0:1]),
                       neg1(n_rack * T_pad, 3)], axis=1),
  ], axis=0)

  # Continuous features -> one block-positioned f32 slab (block-diag layout).
  cont_all = jnp.concatenate([
      jnp.concatenate([srv_em[:, 2:], zf(n_srv * T_pad, k_sfc + k_vnf)], axis=1),
      jnp.concatenate([zf(n_sfc * T_pad, k_srv), sfc_em[:, 1:],
                       zf(n_sfc * T_pad, k_vnf)], axis=1),
      jnp.concatenate([zf(n_vnf * T_pad, k_srv + k_sfc), vnf_em[:, 4:]], axis=1),
  ], axis=0)

  rack_id, core_out = meta["rack_id"], meta["core_out"]
  srv_out, sfc_out, vnf_out = meta["srv_out"], meta["sfc_out"], meta["vnf_out"]
  d_core_in = (n_rack * rack_id + n_srv * srv_out
               + n_sfc * sfc_out + n_vnf * vnf_out)
  out_w = d_core_in + core_out
  out_w_pad = -(-out_w // 128) * 128          # lane-dense HBM writeback

  kernel = functools.partial(
      _state_encoder_kernel, t_pad=T_pad,
      n_rack=n_rack, n_srv=n_srv, n_sfc=n_sfc, n_vnf=n_vnf,
      v_tot=meta["v_tot"], hidden=meta["hidden"],
      srv_out=srv_out, sfc_out=sfc_out, vnf_out=vnf_out,
      rack_id=rack_id, core_out=core_out)

  args = (ids_all, cont_all, packed["w1_ids"], packed["w1_cont"],
          packed["w2_bd"], packed["rack_emb"], packed["core_w1"],
          packed["core_w2"], packed["bias"])

  # TODO(synk): for large B*S add a token-tile grid (pl.cdiv over tokens) with
  # constant weight index_maps, dimension_semantics=("parallel",), and a VMEM
  # budget sized for v7x's 64 MiB (2 TensorCores) via pltpu.CompilerParams.
  out = pl.pallas_call(
      kernel,
      out_shape=jax.ShapeDtypeStruct((T_pad, out_w_pad), jnp.float32),
      in_specs=[pl.BlockSpec(memory_space=pltpu.MemorySpace.VMEM)] * len(args),
      out_specs=pl.BlockSpec(memory_space=pltpu.MemorySpace.VMEM),
  )(*args)

  rows = out[:T]

  def take(col0, n, d):
    return rows[:, col0:col0 + n * d].reshape(B, s_eff, n, d)[:, -1]

  c = 0
  rack_o = take(c, n_rack, rack_id); c += n_rack * rack_id
  srv_o = take(c, n_srv, srv_out); c += n_srv * srv_out
  sfc_o = take(c, n_sfc, sfc_out); c += n_sfc * sfc_out
  vnf_o = take(c, n_vnf, vnf_out); c += n_vnf * vnf_out
  core_o = rows[:, c:c + core_out].reshape(B, s_eff, core_out)[:, -1]
  return rack_o, srv_o, sfc_o, vnf_o, core_o


# ---------------------------------------------------------------------------
# Pure-JAX reference (original, unfolded math; same bf16 matmul precision)
# ---------------------------------------------------------------------------
def reference_forward(params, rack_x, srv_x, sfc_x, vnf_x):
  B, S = rack_x.shape[:2]

  def emb(table, idx_f32):
    return jnp.take(table, idx_f32.astype(jnp.int32), axis=0)

  def mlp(x, p):
    w1, b1, w2, b2 = p
    h = jnp.dot(x.astype(jnp.bfloat16), w1, preferred_element_type=jnp.float32) + b1
    h = jnp.maximum(h, 0.0)
    return jnp.dot(h.astype(jnp.bfloat16), w2, preferred_element_type=jnp.float32) + b2

  rack_e = jnp.squeeze(emb(params["rack_emb"], rack_x), axis=3)
  srv_feat = jnp.concatenate(
      [srv_x[..., 2:], emb(params["srv_emb"], srv_x[..., 0]),
       emb(params["rack_emb"], srv_x[..., 1])], axis=-1)
  srv_o = mlp(srv_feat, params["srv_enc"])
  sfc_feat = jnp.concatenate(
      [sfc_x[..., 1:], emb(params["sfc_emb"], sfc_x[..., 0])], axis=-1)
  sfc_o = mlp(sfc_feat, params["sfc_enc"])
  vnf_feat = jnp.concatenate(
      [vnf_x[..., 4:], emb(params["vnf_emb"], vnf_x[..., 0]),
       emb(params["srv_emb"], vnf_x[..., 1]),
       emb(params["sfc_emb"], vnf_x[..., 2]),
       emb(params["sfc_emb"], vnf_x[..., 3])], axis=-1)
  vnf_o = mlp(vnf_feat, params["vnf_enc"])
  core_in = jnp.concatenate(
      [rack_e.reshape(B, S, -1), srv_o.reshape(B, S, -1),
       sfc_o.reshape(B, S, -1), vnf_o.reshape(B, S, -1)], axis=2)
  core_o = mlp(core_in, params["core_enc"])
  return (rack_e[:, -1], srv_o[:, -1], sfc_o[:, -1], vnf_o[:, -1], core_o[:, -1])


# ---------------------------------------------------------------------------
# Main
# ---------------------------------------------------------------------------
if __name__ == "__main__":
  cfg = dict(max_rack=4, rack_id=4,
             max_srv=8, srv_id=4,
             max_vnf=8, vnf_id=4,
             max_sfc=4, sfc_id=4,
             hidden=32, srv_out=8, sfc_out=8, vnf_out=8, core_out=16)
  B, S = 2, 4

  key = jax.random.PRNGKey(0)
  kp, kd = jax.random.split(key)
  params = init_params(cfg, kp)
  packed, meta = prepare_packed_params(params, cfg)

  ks = jax.random.split(kd, 12)
  # _format outputs: rack (B,S,R,1), srv (B,S,SRV,5), sfc (B,S,SFC,2), vnf (B,S,VNF,7)
  rack_x = jax.random.randint(ks[0], (B, S, cfg["max_rack"], 1), 0, cfg["max_rack"]).astype(jnp.float32)
  srv_x = jnp.concatenate([
      jax.random.randint(ks[1], (B, S, cfg["max_srv"], 1), 0, cfg["max_srv"]).astype(jnp.float32),
      jax.random.randint(ks[2], (B, S, cfg["max_srv"], 1), 0, cfg["max_rack"]).astype(jnp.float32),
      jax.random.uniform(ks[3], (B, S, cfg["max_srv"], 3), jnp.float32),
  ], axis=3)
  sfc_x = jnp.concatenate([
      jax.random.randint(ks[4], (B, S, cfg["max_sfc"], 1), 0, cfg["max_sfc"]).astype(jnp.float32),
      jax.random.uniform(ks[5], (B, S, cfg["max_sfc"], 1), jnp.float32),
  ], axis=3)
  vnf_x = jnp.concatenate([
      jax.random.randint(ks[6], (B, S, cfg["max_vnf"], 1), 0, cfg["max_vnf"]).astype(jnp.float32),
      jax.random.randint(ks[7], (B, S, cfg["max_vnf"], 1), 0, cfg["max_srv"]).astype(jnp.float32),
      jax.random.randint(ks[8], (B, S, cfg["max_vnf"], 1), 0, cfg["max_sfc"]).astype(jnp.float32),
      jax.random.randint(ks[9], (B, S, cfg["max_vnf"], 1), 0, cfg["max_sfc"]).astype(jnp.float32),
      jax.random.uniform(ks[10], (B, S, cfg["max_vnf"], 3), jnp.float32),
  ], axis=3)

  fwd = jax.jit(functools.partial(state_encoder_forward, packed, meta))
  outs = jax.block_until_ready(fwd(rack_x, srv_x, sfc_x, vnf_x))

  refs = jax.block_until_ready(
      jax.jit(functools.partial(reference_forward, params))(rack_x, srv_x, sfc_x, vnf_x))

  expected = [
      (B, cfg["max_rack"], cfg["rack_id"]),
      (B, cfg["max_srv"], cfg["srv_out"]),
      (B, cfg["max_sfc"], cfg["sfc_out"]),
      (B, cfg["max_vnf"], cfg["vnf_out"]),
      (B, cfg["core_out"]),
  ]
  for o, r, e in zip(outs, refs, expected):
    assert o.shape == e, (o.shape, e)
    assert bool(jnp.all(jnp.isfinite(o)))
    assert bool(jnp.allclose(o, r, atol=2e-2, rtol=2e-2)), \
        float(jnp.max(jnp.abs(o - r)))
  print("KERNEL_OK")
</pallas_src>

<mosaic_0001>
module attributes {stable_mosaic.version = 11 : i64} {
  func.func @_state_encoder_kernel(%arg0: memref<192x4xi32, #tpu.memory_space<vmem>>, %arg1: memref<160x7xf32, #tpu.memory_space<vmem>>, %arg2: memref<40x96xbf16, #tpu.memory_space<vmem>>, %arg3: memref<7x96xbf16, #tpu.memory_space<vmem>>, %arg4: memref<96x24xbf16, #tpu.memory_space<vmem>>, %arg5: memref<4x4xbf16, #tpu.memory_space<vmem>>, %arg6: memref<176x32xbf16, #tpu.memory_space<vmem>>, %arg7: memref<32x16xbf16, #tpu.memory_space<vmem>>, %arg8: memref<4x96xf32, #tpu.memory_space<vmem>>, %arg9: memref<8x256xf32, #tpu.memory_space<vmem>>) attributes {dimension_semantics = [], scalar_prefetch = 0 : i64, scratch_operands = 0 : i64, tpu.core_type = #tpu.core_type<tc>} {
    %c0 = arith.constant 0 : index
    %c0_0 = arith.constant 0 : index
    %0 = vector.load %arg8[%c0, %c0_0] : memref<4x96xf32, #tpu.memory_space<vmem>>, vector<4x96xf32>
    %1 = vector.extract_strided_slice %0 {offsets = [0, 0], sizes = [1, 96], strides = [1, 1]} : vector<4x96xf32> to vector<1x96xf32>
    %2 = vector.extract_strided_slice %0 {offsets = [1, 0], sizes = [1, 24], strides = [1, 1]} : vector<4x96xf32> to vector<1x24xf32>
    %3 = vector.extract_strided_slice %0 {offsets = [2, 0], sizes = [1, 32], strides = [1, 1]} : vector<4x96xf32> to vector<1x32xf32>
    %4 = vector.extract_strided_slice %0 {offsets = [3, 0], sizes = [1, 16], strides = [1, 1]} : vector<4x96xf32> to vector<1x16xf32>
    %c0_1 = arith.constant 0 : index
    %c0_2 = arith.constant 0 : index
    %5 = vector.load %arg0[%c0_1, %c0_2] : memref<192x4xi32, #tpu.memory_space<vmem>>, vector<160x4xi32>
    %6 = tpu.iota {dimensions = array<i32: 1>} : vector<160x40xi32>
    %7 = vector.extract_strided_slice %5 {offsets = [0, 0], sizes = [160, 1], strides = [1, 1]} : vector<160x4xi32> to vector<160x1xi32>
    %8 = vector.broadcast %7 : vector<160x1xi32> to vector<160x40xi32>
    %9 = arith.cmpi eq, %8, %6 : vector<160x40xi32>
    %10 = vector.extract_strided_slice %5 {offsets = [0, 1], sizes = [160, 1], strides = [1, 1]} : vector<160x4xi32> to vector<160x1xi32>
    %11 = vector.broadcast %10 : vector<160x1xi32> to vector<160x40xi32>
    %12 = arith.cmpi eq, %11, %6 : vector<160x40xi32>
    %13 = arith.ori %9, %12 : vector<160x40xi1>
    %14 = vector.extract_strided_slice %5 {offsets = [0, 2], sizes = [160, 1], strides = [1, 1]} : vector<160x4xi32> to vector<160x1xi32>
    %15 = vector.broadcast %14 : vector<160x1xi32> to vector<160x40xi32>
    %16 = arith.cmpi eq, %15, %6 : vector<160x40xi32>
    %17 = arith.ori %13, %16 : vector<160x40xi1>
    %18 = vector.extract_strided_slice %5 {offsets = [0, 3], sizes = [160, 1], strides = [1, 1]} : vector<160x4xi32> to vector<160x1xi32>
    %19 = vector.broadcast %18 : vector<160x1xi32> to vector<160x40xi32>
    %20 = arith.cmpi eq, %19, %6 : vector<160x40xi32>
    %21 = arith.ori %17, %20 : vector<160x40xi1>
    %22 = arith.extui %21 : vector<160x40xi1> to vector<160x40xi32>
    %23 = arith.sitofp %22 : vector<160x40xi32> to vector<160x40xf32>
    %24 = arith.truncf %23 : vector<160x40xf32> to vector<160x40xbf16>
    %c0_3 = arith.constant 0 : index
    %c0_4 = arith.constant 0 : index
    %25 = vector.load %arg2[%c0_3, %c0_4] : memref<40x96xbf16, #tpu.memory_space<vmem>>, vector<40x96xbf16>
    %cst = arith.constant dense<0.000000e+00> : vector<160x96xf32>
    %26 = tpu.matmul %24, %25, %cst {dimension_numbers = #tpu.dot_dimension_numbers<[1], [0], [0], [1], [0, 0, 1, 1], [], []>} : vector<160x40xbf16>, vector<40x96xbf16>, vector<160x96xf32> -> vector<160x96xf32>
    %c0_5 = arith.constant 0 : index
    %c0_6 = arith.constant 0 : index
    %27 = vector.load %arg1[%c0_5, %c0_6] : memref<160x7xf32, #tpu.memory_space<vmem>>, vector<160x7xf32>
    %28 = arith.truncf %27 : vector<160x7xf32> to vector<160x7xbf16>
    %c0_7 = arith.constant 0 : index
    %c0_8 = arith.constant 0 : index
    %29 = vector.load %arg3[%c0_7, %c0_8] : memref<7x96xbf16, #tpu.memory_space<vmem>>, vector<7x96xbf16>
    %cst_9 = arith.constant dense<0.000000e+00> : vector<160x96xf32>
    %30 = tpu.matmul %28, %29, %cst_9 {dimension_numbers = #tpu.dot_dimension_numbers<[1], [0], [0], [1], [0, 0, 1, 1], [], []>} : vector<160x7xbf16>, vector<7x96xbf16>, vector<160x96xf32> -> vector<160x96xf32>
    %31 = arith.addf %26, %30 : vector<160x96xf32>
    %32 = vector.broadcast %1 : vector<1x96xf32> to vector<160x96xf32>
    %33 = arith.addf %31, %32 : vector<160x96xf32>
    %cst_10 = arith.constant 0.000000e+00 : f32
    %34 = vector.broadcast %cst_10 : f32 to vector<160x96xf32>
    %35 = arith.maximumf %33, %34 : vector<160x96xf32>
    %36 = arith.truncf %35 : vector<160x96xf32> to vector<160x96xbf16>
    %c0_11 = arith.constant 0 : index
    %c0_12 = arith.constant 0 : index
    %37 = vector.load %arg4[%c0_11, %c0_12] : memref<96x24xbf16, #tpu.memory_space<vmem>>, vector<96x24xbf16>
    %cst_13 = arith.constant dense<0.000000e+00> : vector<160x24xf32>
    %38 = tpu.matmul %36, %37, %cst_13 {dimension_numbers = #tpu.dot_dimension_numbers<[1], [0], [0], [1], [0, 0, 1, 1], [], []>} : vector<160x96xbf16>, vector<96x24xbf16>, vector<160x24xf32> -> vector<160x24xf32>
    %39 = vector.broadcast %2 : vector<1x24xf32> to vector<160x24xf32>
    %40 = arith.addf %38, %39 : vector<160x24xf32>
    %c160 = arith.constant 160 : index
    %c0_14 = arith.constant 0 : index
    %41 = vector.load %arg0[%c160, %c0_14] : memref<192x4xi32, #tpu.memory_space<vmem>>, vector<32x1xi32>
    %42 = tpu.iota {dimensions = array<i32: 1>} : vector<32x4xi32>
    %43 = vector.broadcast %41 : vector<32x1xi32> to vector<32x4xi32>
    %44 = arith.cmpi eq, %43, %42 : vector<32x4xi32>
    %45 = arith.extui %44 : vector<32x4xi1> to vector<32x4xi32>
    %46 = arith.sitofp %45 : vector<32x4xi32> to vector<32x4xf32>
    %47 = arith.truncf %46 : vector<32x4xf32> to vector<32x4xbf16>
    %c0_15 = arith.constant 0 : index
    %c0_16 = arith.constant 0 : index
    %48 = vector.load %arg5[%c0_15, %c0_16] : memref<4x4xbf16, #tpu.memory_space<vmem>>, vector<4x4xbf16>
    %cst_17 = arith.constant dense<0.000000e+00> : vector<32x4xf32>
    %49 = tpu.matmul %47, %48, %cst_17 {dimension_numbers = #tpu.dot_dimension_numbers<[1], [0], [0], [1], [0, 0, 1, 1], [], []>} : vector<32x4xbf16>, vector<4x4xbf16>, vector<32x4xf32> -> vector<32x4xf32>
    %50 = vector.extract_strided_slice %49 {offsets = [0, 0], sizes = [8, 4], strides = [1, 1]} : vector<32x4xf32> to vector<8x4xf32>
    %51 = vector.extract_strided_slice %49 {offsets = [8, 0], sizes = [8, 4], strides = [1, 1]} : vector<32x4xf32> to vector<8x4xf32>
    %52 = vector.extract_strided_slice %49 {offsets = [16, 0], sizes = [8, 4], strides = [1, 1]} : vector<32x4xf32> to vector<8x4xf32>
    %53 = vector.extract_strided_slice %49 {offsets = [24, 0], sizes = [8, 4], strides = [1, 1]} : vector<32x4xf32> to vector<8x4xf32>
    %54 = tpu.concatenate %50, %51, %52, %53 in 1 : vector<8x4xf32>, vector<8x4xf32>, vector<8x4xf32>, vector<8x4xf32> -> vector<8x16xf32>
    %55 = vector.extract_strided_slice %40 {offsets = [0, 0], sizes = [8, 8], strides = [1, 1]} : vector<160x24xf32> to vector<8x8xf32>
    %56 = vector.extract_strided_slice %40 {offsets = [8, 0], sizes = [8, 8], strides = [1, 1]} : vector<160x24xf32> to vector<8x8xf32>
    %57 = vector.extract_strided_slice %40 {offsets = [16, 0], sizes = [8, 8], strides = [1, 1]} : vector<160x24xf32> to vector<8x8xf32>
    %58 = vector.extract_strided_slice %40 {offsets = [24, 0], sizes = [8, 8], strides = [1, 1]} : vector<160x24xf32> to vector<8x8xf32>
    %59 = vector.extract_strided_slice %40 {offsets = [32, 0], sizes = [8, 8], strides = [1, 1]} : vector<160x24xf32> to vector<8x8xf32>
    %60 = vector.extract_strided_slice %40 {offsets = [40, 0], sizes = [8, 8], strides = [1, 1]} : vector<160x24xf32> to vector<8x8xf32>
    %61 = vector.extract_strided_slice %40 {offsets = [48, 0], sizes = [8, 8], strides = [1, 1]} : vector<160x24xf32> to vector<8x8xf32>
    %62 = vector.extract_strided_slice %40 {offsets = [56, 0], sizes = [8, 8], strides = [1, 1]} : vector<160x24xf32> to vector<8x8xf32>
    %63 = tpu.concatenate %55, %56, %57, %58, %59, %60, %61, %62 in 1 : vector<8x8xf32>, vector<8x8xf32>, vector<8x8xf32>, vector<8x8xf32>, vector<8x8xf32>, vector<8x8xf32>, vector<8x8xf32>, vector<8x8xf32> -> vector<8x64xf32>
    %64 = vector.extract_strided_slice %40 {offsets = [64, 8], sizes = [8, 8], strides = [1, 1]} : vector<160x24xf32> to vector<8x8xf32>
    %65 = vector.extract_strided_slice %40 {offsets = [72, 8], sizes = [8, 8], strides = [1, 1]} : vector<160x24xf32> to vector<8x8xf32>
    %66 = vector.extract_strided_slice %40 {offsets = [80, 8], sizes = [8, 8], strides = [1, 1]} : vector<160x24xf32> to vector<8x8xf32>
    %67 = vector.extract_strided_slice %40 {offsets = [88, 8], sizes = [8, 8], strides = [1, 1]} : vector<160x24xf32> to vector<8x8xf32>
    %68 = tpu.concatenate %64, %65, %66, %67 in 1 : vector<8x8xf32>, vector<8x8xf32>, vector<8x8xf32>, vector<8x8xf32> -> vector<8x32xf32>
    %69 = vector.extract_strided_slice %40 {offsets = [96, 16], sizes = [8, 8], strides = [1, 1]} : vector<160x24xf32> to vector<8x8xf32>
    %70 = vector.extract_strided_slice %40 {offsets = [104, 16], sizes = [8, 8], strides = [1, 1]} : vector<160x24xf32> to vector<8x8xf32>
    %71 = vector.extract_strided_slice %40 {offsets = [112, 16], sizes = [8, 8], strides = [1, 1]} : vector<160x24xf32> to vector<8x8xf32>
    %72 = vector.extract_strided_slice %40 {offsets = [120, 16], sizes = [8, 8], strides = [1, 1]} : vector<160x24xf32> to vector<8x8xf32>
    %73 = vector.extract_strided_slice %40 {offsets = [128, 16], sizes = [8, 8], strides = [1, 1]} : vector<160x24xf32> to vector<8x8xf32>
    %74 = vector.extract_strided_slice %40 {offsets = [136, 16], sizes = [8, 8], strides = [1, 1]} : vector<160x24xf32> to vector<8x8xf32>
    %75 = vector.extract_strided_slice %40 {offsets = [144, 16], sizes = [8, 8], strides = [1, 1]} : vector<160x24xf32> to vector<8x8xf32>
    %76 = vector.extract_strided_slice %40 {offsets = [152, 16], sizes = [8, 8], strides = [1, 1]} : vector<160x24xf32> to vector<8x8xf32>
    %77 = tpu.concatenate %69, %70, %71, %72, %73, %74, %75, %76 in 1 : vector<8x8xf32>, vector<8x8xf32>, vector<8x8xf32>, vector<8x8xf32>, vector<8x8xf32>, vector<8x8xf32>, vector<8x8xf32>, vector<8x8xf32> -> vector<8x64xf32>
    %78 = tpu.concatenate %54, %63, %68, %77 in 1 : vector<8x16xf32>, vector<8x64xf32>, vector<8x32xf32>, vector<8x64xf32> -> vector<8x176xf32>
    %79 = arith.truncf %78 : vector<8x176xf32> to vector<8x176xbf16>
    %c0_18 = arith.constant 0 : index
    %c0_19 = arith.constant 0 : index
    %80 = vector.load %arg6[%c0_18, %c0_19] : memref<176x32xbf16, #tpu.memory_space<vmem>>, vector<176x32xbf16>
    %cst_20 = arith.constant dense<0.000000e+00> : vector<8x32xf32>
    %81 = tpu.matmul %79, %80, %cst_20 {dimension_numbers = #tpu.dot_dimension_numbers<[1], [0], [0], [1], [0, 0, 1, 1], [], []>} : vector<8x176xbf16>, vector<176x32xbf16>, vector<8x32xf32> -> vector<8x32xf32>
    %82 = vector.broadcast %3 : vector<1x32xf32> to vector<8x32xf32>
    %83 = arith.addf %81, %82 : vector<8x32xf32>
    %cst_21 = arith.constant 0.000000e+00 : f32
    %84 = vector.broadcast %cst_21 : f32 to vector<8x32xf32>
    %85 = arith.maximumf %83, %84 : vector<8x32xf32>
    %86 = arith.truncf %85 : vector<8x32xf32> to vector<8x32xbf16>
    %c0_22 = arith.constant 0 : index
    %c0_23 = arith.constant 0 : index
    %87 = vector.load %arg7[%c0_22, %c0_23] : memref<32x16xbf16, #tpu.memory_space<vmem>>, vector<32x16xbf16>
    %cst_24 = arith.constant dense<0.000000e+00> : vector<8x16xf32>
    %88 = tpu.matmul %86, %87, %cst_24 {dimension_numbers = #tpu.dot_dimension_numbers<[1], [0], [0], [1], [0, 0, 1, 1], [], []>} : vector<8x32xbf16>, vector<32x16xbf16>, vector<8x16xf32> -> vector<8x16xf32>
    %89 = vector.broadcast %4 : vector<1x16xf32> to vector<8x16xf32>
    %90 = arith.addf %88, %89 : vector<8x16xf32>
    %c0_25 = arith.constant 0 : index
    %c0_26 = arith.constant 0 : index
    %91 = vector.load %arg9[%c0_25, %c0_26] : memref<8x256xf32, #tpu.memory_space<vmem>>, vector<8x176xf32>
    tpu.vector_store %arg9[%c0_25, %c0_26], %78 {strides = array<i32>} : memref<8x256xf32, #tpu.memory_space<vmem>>, vector<8x176xf32>,
    %c0_27 = arith.constant 0 : index
    %c176 = arith.constant 176 : index
    %92 = vector.load %arg9[%c0_27, %c176] : memref<8x256xf32, #tpu.memory_space<vmem>>, vector<8x16xf32>
    tpu.vector_store %arg9[%c0_27, %c176], %90 {strides = array<i32>} : memref<8x256xf32, #tpu.memory_space<vmem>>, vector<8x16xf32>,
    return
  }
}

</mosaic_0001>

<bundles_post_ra>
// kernel: state_encoder_forward.1
= control target key start
LH: loop header
LB: loop body
LE: loop exit
PB: predicated region body
PF: predicated region fallthrough
CT: control target
= control target key end

     0   :  { %v1531_v0 = vmov 3   ;;  %v1532_v1 = vmov 1   ;;  %v1533_v3 = vmov 2   ;;  %v1534_v5 = vmov 0   ;;  %s1538_s23 = smov 16   ;;  %s1539_s24 = smov 24   ;;  %s2238_s0 = inlined_call_operand.vmem [shape: s32[192,4], index: 0, kind: input, shape index: {}]   ;;  %s2239_s2 = inlined_call_operand.vmem [shape: bf16[40,96], index: 2, kind: input, shape index: {}]   ;;  %s2240_s3 = inlined_call_operand.vmem [shape: bf16[7,96], index: 3, kind: input, shape index: {}]   ;;  %s2241_s1 = inlined_call_operand.vmem [shape: f32[160,7], index: 1, kind: input, shape index: {}]   ;;  %s2242_s4 = inlined_call_operand.vmem [shape: bf16[96,24], index: 4, kind: input, shape index: {}]   ;;  %s2243_s8 = inlined_call_operand.vmem [shape: f32[4,96], index: 8, kind: input, shape index: {}]   ;;  %s2244_s5 = inlined_call_operand.vmem [shape: bf16[4,4], index: 5, kind: input, shape index: {}]   ;;  %s2245_s6 = inlined_call_operand.vmem [shape: bf16[176,32], index: 6, kind: input, shape index: {}]   ;;  %s2246_s9 = inlined_call_operand.vmem [shape: f32[8,256], index: 9, kind: output, shape index: {}]   ;;  %s2247_s7 = inlined_call_operand.vmem [shape: bf16[32,16], index: 7, kind: input, shape index: {}]  }
   0x1   :  { %1458 = vset.pattern.permute.xlu0 %v1531_v0  ;;  %1456 = vset.pattern.permute.xlu1 %v1532_v1  ;;  %v34_v2 = vld [vmem:[%s2238_s0] sm:$0xff]  ;;  %v35_v4 = vld [vmem:[%s2238_s0 + $0x8] sm:$0xff]  ;;  %v36_v6 = vld [vmem:[%s2238_s0 + $0x10] sm:$0xff]  ;;  %vm554_vm0 = vcmask 1043456   ;;  %vm553_vm1 = vcmask 1042432   ;;  %v1535_v20 = vmov 65535   ;;  %v54_v35 = vlaneseq }
   0x2   :  { %337 = vperm.xlu0 %1458, %v34_v2   ;;  %137 = vperm.xlu1 %1456, %v34_v2   ;;  %v38_v7 = vld [vmem:[%s2238_s0 + $0x20] sm:$0xff]  ;;  %v37_v8 = vld [vmem:[%s2238_s0 + $0x18] sm:$0xff]  ;;  %v40_v9 = vld [vmem:[%s2238_s0 + $0x30] sm:$0xff]  ;;  %v555_v21 = vsel %vm553_vm1, 4294967295, %v1535_v20  ;;  %vm522_vm2 = vcmask 56320   ;;  %v1536_v47 = vmov 0.0  }
   0x3   :  { %1457 = vset.pattern.permute.xlu2 %v1533_v3  ;;  %v39_v10 = vld [vmem:[%s2238_s0 + $0x28] sm:$0xff]  ;;  %v1639_v11 = vld [vmem:[%s2238_s0 + $0x40] sm:$0xff]  ;;  %v41_v12 = vld [vmem:[%s2238_s0 + $0x38] sm:$0xff]  ;;  %v556_v24 = vsel %vm554_vm0, %v555_v21, 0  ;;  %v1713_v38 = vand.u32 127, %v54_v35  ;;  %vm634_vm1 = vcmask 326656  }
   0x4   :  { %237 = vperm.xlu2 %1457, %v34_v2   ;;  %v490_v13 = vld [vmem:[%s2239_s2 + $0x10] sm:$0xf]  ;;  %v1412_v18 = vld [vmem:[%s2239_s2 + $0x8] sm:$0xff]  ;;  %v521_v23 = vld [vmem:[%s2240_s3] sm:$0xf]  ;;  %s1541_s25 = smov 40  }
   0x5   :  { %v628_v14 = vunpack.c.l.b16 %v490_v13  ;;  %v1670_v22 = vld [vmem:[%s2238_s0 + $0x50] sm:$0xff]  ;;  %v558_v25 = vand.u32 %v556_v24, %v521_v23  ;;  %v1411_v26 = vld [vmem:[%s2239_s2] sm:$0xff]  ;;  %v492_v28 = vld [vmem:[%s2241_s1 + $0x8] sm:$0xff]  ;;  %s1542_s26 = smov 48   ;;  %s1543_s27 = smov 56  }
   0x6   :  { %v491_v27 = vld [vmem:[%s2241_s1] sm:$0xff]  ;;  %v43_v30 = vld [vmem:[%s2238_s0 + $0x48] sm:$0xff]  ;;  %v1711_v37 = vld [vmem:[%s2238_s0 + $0x58] sm:$0xff]  ;;  %s1544_s30 = smov 120   ;;  %s1546_s10 = smov 4  }
   0x7   :  { %v631_v16 = vpack.c.b16 %v628_v14, %v628_v14  ;;  %567 = vmatpush.bf16.msra.mxu0 %v558_v25  ;;  %v511_v29 = vpack.c.bf16 %v492_v28, %v491_v27  ;;  %v1699_v32 = vld [vmem:[%s2238_s0 + $0x68] sm:$0xff]  ;;  %v493_v42 = vld [vmem:[%s2241_s1 + $0x10] sm:$0xff]  ;;  %v494_v43 = vld [vmem:[%s2241_s1 + $0x18] sm:$0xff]  ;;  %s1547_s11 = smov 80   ;;  %s1548_s12 = smov 12  }
   0x8   :  { %v512_v46 = vpack.c.bf16 %v494_v43, %v493_v42  ;;  %v495_v58 = vld [vmem:[%s2241_s1 + $0x20] sm:$0xff]  ;;  %v496_v59 = vld [vmem:[%s2241_s1 + $0x28] sm:$0xff]  ;;  %v1796_v13 = vld [vmem:[%s2238_s0 + $0x78] sm:$0xff] }
   0x9   :  { %v666_v17 = vsel %vm554_vm0, %v631_v16, 0  ;;  %v513_v61 = vpack.c.bf16 %v496_v59, %v495_v58  ;;  %v46_v62 = vld [vmem:[%s2238_s0 + $0x60] sm:$0xff]  ;;  %v497_v16 = vld [vmem:[%s2241_s1 + $0x30] sm:$0xff]  ;;  %v1418_v42 = vld [vmem:[%s2242_s4 + $0x28] sm:$0xff] }
   0xa   :  { %1459 = vset.pattern.permute.xlu0 %v1534_v5  ;;  %140 = vperm.xlu1 %1456, %v35_v4   ;;  %v1875_v35 = vld [vmem:[%s2238_s0 + $0x90] sm:$0xff]  ;;  %v1417_v43 = vld [vmem:[%s2242_s4 + $0x20] sm:$0xff]  ;;  %v53_v58 = vld [vmem:[%s2238_s0 + $0x98] sm:$0xff] }
   0xb   :  { %57 = vperm.xlu0 %1459, %v34_v2   ;;  %673 = vmatpush.bf16.msra.mxu1 %v666_v17  ;;  %v498_v17 = vld [vmem:[%s2241_s1 + $0x38] sm:$0xff] }
   0xc   :  { %240 = vperm.xlu2 %1457, %v35_v4   ;;  %1289 = vmatmul.msk.bf16.vlgmr.msra.gmra.mxu0 %vm522_vm2, %v511_v29 }
   0xd   :  { %860 = vmatpush.bf16.msra.mxu2 %v1418_v42  ;;  %1432 = vmatpush.bf16.msra.mxu3 %v1418_v42 }
   0xf   :  { %674 = vmatpush.bf16.msra.mxu1 %v1412_v18  ;;  %v514_v18 = vpack.c.bf16 %v498_v17, %v497_v16  ;;  %v503_v16 = vld [vmem:[%s2241_s1 + $0x60] sm:$0xff]  ;;  %v504_v17 = vld [vmem:[%s2241_s1 + $0x68] sm:$0xff] }
  0x11   :  { %861 = vmatpush.bf16.msra.mxu2 %v1417_v43  ;;  %1433 = vmatpush.bf16.msra.mxu3 %v1417_v43 }
  0x12   :  { %1460 = vset.pattern.permute.xlu1 %v1531_v0 }
  0x13   :  { %60 = vperm.xlu0 %1459, %v35_v4   ;;  %340 = vperm.xlu1 %1460, %v35_v4  }
  0x14   :  { %1461 = vset.pattern.permute.xlu2 %v1534_v5  ;;  %675 = vmatpush.bf16.msra.mxu1 %v1411_v26  ;;  %v1843_v26 = vld [vmem:[%s2238_s0 + $0x88] sm:$0xff] }
  0x15   :  { %63 = vperm.xlu2 %1461, %v36_v6  }
  0x1b   :  { %69 = vperm.xlu0 %1459, %v38_v7   ;;  %1462 = vset.pattern.permute.xlu1 %v1534_v5 }
  0x1c   :  { %66 = vperm.xlu1 %1462, %v37_v8   ;;  %1290 = vmatmul.msk.bf16.gmra.mxu0 %vm522_vm2, %v512_v46  ;;  %v1416_v46 = vld [vmem:[%s2242_s4 + $0x18] sm:$0xff] }
  0x1d   :  { %1463 = vset.pattern.permute.xlu2 %v1532_v1  ;;  %862 = vmatpush.bf16.msra.mxu2 %v1416_v46 }
  0x1e   :  { %143 = vperm.xlu2 %1463, %v36_v6   ;;  %1434 = vmatpush.bf16.msra.mxu3 %v1416_v46 }
  0x23   :  { %1468 = vset.pattern.permute.xlu0 %v1532_v1 }
  0x24   :  { %146 = vperm.xlu0 %1468, %v37_v8   ;;  %1464 = vset.pattern.permute.xlu1 %v1533_v3 }
  0x25   :  { %243 = vperm.xlu1 %1464, %v36_v6  }
  0x26   :  { %1465 = vset.pattern.permute.xlu2 %v1533_v3 }
  0x27   :  { %246 = vperm.xlu2 %1465, %v37_v8  }
  0x2c   :  { %155 = vperm.xlu0 %1468, %v40_v9   ;;  %1291 = vmatmul.msk.bf16.gmra.mxu0 %vm522_vm2, %v513_v61 }
  0x2d   :  { %1466 = vset.pattern.permute.xlu1 %v1531_v0 }
  0x2e   :  { %343 = vperm.xlu1 %1466, %v36_v6  }
  0x2f   :  { %1467 = vset.pattern.permute.xlu2 %v1531_v0 }
  0x30   :  { %346 = vperm.xlu2 %1467, %v37_v8  }
  0x34   :  { %1477 = vset.pattern.permute.xlu0 %v1533_v3 }
  0x35   :  { %252 = vperm.xlu0 %1477, %v39_v10  }
  0x36   :  { %1469 = vset.pattern.permute.xlu1 %v1534_v5 }
  0x37   :  { %72 = vperm.xlu1 %1469, %v39_v10  }
  0x38   :  { %1470 = vset.pattern.permute.xlu2 %v1532_v1 }
  0x39   :  { %149 = vperm.xlu2 %1470, %v38_v7  }
  0x3c   :  { %1292 = vmatmul.msk.bf16.gmra.mxu0 %vm522_vm2, %v514_v18 }
  0x3d   :  { %261 = vperm.xlu0 %1477, %v1639_v11  }
  0x3f   :  { %1471 = vset.pattern.permute.xlu1 %v1532_v1 }
  0x40   :  { %152 = vperm.xlu1 %1471, %v39_v10  }
  0x41   :  { %1472 = vset.pattern.permute.xlu2 %v1533_v3 }
  0x42   :  { %249 = vperm.xlu2 %1472, %v38_v7  }
  0x45   :  { %1486 = vset.pattern.permute.xlu0 %v1531_v0 }
  0x46   :  { %358 = vperm.xlu0 %1486, %v41_v12  }
  0x48   :  { %1473 = vset.pattern.permute.xlu1 %v1531_v0 }
  0x49   :  { %349 = vperm.xlu1 %1473, %v38_v7  }
  0x4a   :  { %1474 = vset.pattern.permute.xlu2 %v1531_v0 }
  0x4b   :  { %352 = vperm.xlu2 %1474, %v39_v10  }
  0x4e   :  { %367 = vperm.xlu0 %1486, %v1670_v22  }
  0x51   :  { %1475 = vset.pattern.permute.xlu1 %v1534_v5 }
  0x52   :  { %75 = vperm.xlu1 %1475, %v40_v9  }
  0x53   :  { %1476 = vset.pattern.permute.xlu2 %v1534_v5 }
  0x54   :  { %78 = vperm.xlu2 %1476, %v41_v12  }
  0x56   :  { %1499 = vset.pattern.permute.xlu0 %v1532_v1 }
  0x57   :  { %176 = vperm.xlu0 %1499, %v1699_v32  }
  0x5a   :  { %1478 = vset.pattern.permute.xlu1 %v1532_v1 }
  0x5b   :  { %158 = vperm.xlu1 %1478, %v41_v12  }
  0x5c   :  { %1479 = vset.pattern.permute.xlu2 %v1533_v3 }
  0x5d   :  { %255 = vperm.xlu2 %1479, %v40_v9  }
  0x5e   :  { %v1657_v15 = vpop.permute.xlu2 %237 }
  0x5f   :  { %1500 = vset.pattern.permute.xlu0 %v1534_v5  ;;  %vm296_vm5 = vcmp.eq.s32.totalorder %v1657_v15, %v1713_v38 }
  0x60   :  { %90 = vperm.xlu0 %1500, %v1711_v37  }
  0x63   :  { %1480 = vset.pattern.permute.xlu1 %v1533_v3 }
  0x64   :  { %258 = vperm.xlu1 %1480, %v41_v12  }
  0x65   :  { %1481 = vset.pattern.permute.xlu2 %v1531_v0 }
  0x66   :  { %355 = vperm.xlu2 %1481, %v40_v9   ;;  %v1665_v19 = vpop.permute.xlu2 %240  ;;  %v1785_v9 = vld [vmem:[%s2238_s0 + $0x70] sm:$0xff] }
  0x67   :  { %vm297_vm12 = vcmp.eq.s32.totalorder %v1665_v19, %v1713_v38 }
  0x68   :  { %99 = vperm.xlu0 %1500, %v1785_v9  }
  0x6c   :  { %1482 = vset.pattern.permute.xlu1 %v1534_v5 }
  0x6d   :  { %81 = vperm.xlu1 %1482, %v1639_v11  }
  0x6e   :  { %1483 = vset.pattern.permute.xlu2 %v1534_v5 }
  0x6f   :  { %84 = vperm.xlu2 %1483, %v43_v30   ;;  %v1693_v31 = vpop.permute.xlu2 %63 }
  0x70   :  { %1509 = vset.pattern.permute.xlu0 %v1533_v3 }
  0x71   :  { %282 = vperm.xlu0 %1509, %v1796_v13  }
  0x74   :  { %v138_v33 = vpop.permute.xlu1 %137  ;;  %v338_v34 = vpop.permute.xlu0 %337 }
  0x75   :  { %1484 = vset.pattern.permute.xlu1 %v1532_v1  ;;  %vm196_vm4 = vcmp.eq.s32.totalorder %v138_v33, %v1713_v38  ;;  %vm396_vm7 = vcmp.eq.s32.totalorder %v338_v34, %v1713_v38 }
  0x76   :  { %161 = vperm.xlu1 %1484, %v1639_v11  }
  0x77   :  { %1485 = vset.pattern.permute.xlu2 %v1532_v1 }
  0x78   :  { %164 = vperm.xlu2 %1485, %v43_v30   ;;  %v1705_v36 = vpop.permute.xlu2 %143 }
  0x79   :  { %1514 = vset.pattern.permute.xlu0 %v1532_v1 }
  0x7c   :  { %v141_v39 = vpop.permute.xlu1 %140 }
  0x7d   :  { %v58_v40 = vpop.permute.xlu0 %57  ;;  %vm197_vm9 = vcmp.eq.s32.totalorder %v141_v39, %v1713_v38 }
  0x7e   :  { %vm116_vm3 = vcmp.eq.s32.totalorder %v58_v40, %v1713_v38  ;;  %1487 = vset.pattern.permute.xlu1 %v1533_v3 }
  0x7f   :  { %264 = vperm.xlu1 %1487, %v43_v30   ;;  %vm216_vm6 = vmor %vm116_vm3, %vm196_vm4 }
  0x80   :  { %1488 = vset.pattern.permute.xlu2 %v1531_v0  ;;  %vm316_vm8 = vmor %vm216_vm6, %vm296_vm5 }
  0x81   :  { %361 = vperm.xlu2 %1488, %v1639_v11   ;;  %v247_v41 = vpop.permute.xlu2 %246  ;;  %vm416_vm10 = vmor %vm316_vm8, %vm396_vm7  ;;  %vm118_vm7 = vcmp.eq.s32.totalorder %v1693_v31, %v1713_v38  ;;  %vm198_vm8 = vcmp.eq.s32.totalorder %v1705_v36, %v1713_v38  ;;  %v499_v36 = vld [vmem:[%s2241_s1 + $0x40] sm:$0xff] }
  0x82   :  { %v1269_v48 = vsel %vm416_vm10, 1.0, %v1536_v47  ;;  %vm299_vm5 = vcmp.eq.s32.totalorder %v247_v41, %v1713_v38 }
  0x85   :  { %v61_v44 = vpop.permute.xlu0 %60  ;;  %v341_v45 = vpop.permute.xlu1 %340 }
  0x86   :  { %vm117_vm11 = vcmp.eq.s32.totalorder %v61_v44, %v1713_v38  ;;  %vm397_vm15 = vcmp.eq.s32.totalorder %v341_v45, %v1713_v38 }
  0x87   :  { %vm217_vm13 = vmor %vm117_vm11, %vm197_vm9  ;;  %1489 = vset.pattern.permute.xlu1 %v1531_v0 }
  0x88   :  { %vm317_vm14 = vmor %vm217_vm13, %vm297_vm12  ;;  %364 = vperm.xlu1 %1489, %v43_v30  }
  0x89   :  { %vm417_vm0 = vmor %vm317_vm14, %vm397_vm15  ;;  %1490 = vset.pattern.permute.xlu2 %v1534_v5 }
  0x8a   :  { %v1270_v49 = vsel %vm417_vm0, 1.0, %v1536_v47  ;;  %87 = vperm.xlu2 %1490, %v1670_v22   ;;  %v347_v50 = vpop.permute.xlu2 %346  ;;  %vm218_vm12 = vmor %vm118_vm7, %vm198_vm8 }
  0x8b   :  { %v476_v51 = vpack.c.bf16 %v1270_v49, %v1269_v48  ;;  %vm399_vm10 = vcmp.eq.s32.totalorder %v347_v50, %v1713_v38  ;;  %v1415_v48 = vld [vmem:[%s2242_s4 + $0x10] sm:$0xff] }
  0x8c   :  { %863 = vmatpush.bf16.msra.mxu2 %v1415_v48  ;;  %1435 = vmatpush.bf16.msra.mxu3 %v1415_v48 }
  0x8d   :  { %1307 = vmatmul.msk.bf16.vlgmr.msra.gmra.mxu1 %vm634_vm1, %v476_v51  ;;  %v1742_v52 = vpop.permute.xlu0 %69  ;;  %v1414_v51 = vld [vmem:[%s2242_s4 + $0x8] sm:$0xff] }
  0x8e   :  { %v67_v53 = vpop.permute.xlu1 %66  ;;  %vm120_vm7 = vcmp.eq.s32.totalorder %v1742_v52, %v1713_v38  ;;  %v1413_v52 = vld [vmem:[%s2242_s4] sm:$0xff] }
  0x8f   :  { %vm119_vm4 = vcmp.eq.s32.totalorder %v67_v53, %v1713_v38 }
  0x90   :  { %1491 = vset.pattern.permute.xlu1 %v1532_v1  ;;  %864 = vmatpush.bf16.msra.mxu2 %v1414_v51 }
  0x91   :  { %167 = vperm.xlu1 %1491, %v1670_v22   ;;  %1436 = vmatpush.bf16.msra.mxu3 %v1414_v51 }
  0x92   :  { %1492 = vset.pattern.permute.xlu2 %v1532_v1 }
  0x93   :  { %170 = vperm.xlu2 %1492, %v1711_v37   ;;  %v1748_v54 = vpop.permute.xlu2 %149 }
  0x94   :  { %vm200_vm8 = vcmp.eq.s32.totalorder %v1748_v54, %v1713_v38  ;;  %v501_v54 = vld [vmem:[%s2241_s1 + $0x50] sm:$0xff]  ;;  %865 = vmatpush.bf16.msra.mxu2 %v1413_v52 }
  0x95   :  { %1437 = vmatpush.bf16.msra.mxu3 %v1413_v52 }
  0x96   :  { %v147_v55 = vpop.permute.xlu0 %146 }
  0x97   :  { %vm199_vm3 = vcmp.eq.s32.totalorder %v147_v55, %v1713_v38  ;;  %v244_v56 = vpop.permute.xlu1 %243  ;;  %v502_v55 = vld [vmem:[%s2241_s1 + $0x58] sm:$0xff] }
  0x98   :  { %vm219_vm6 = vmor %vm119_vm4, %vm199_vm3  ;;  %vm298_vm11 = vcmp.eq.s32.totalorder %v244_v56, %v1713_v38 }
  0x99   :  { %1493 = vset.pattern.permute.xlu1 %v1533_v3  ;;  %vm319_vm9 = vmor %vm219_vm6, %vm299_vm5 }
  0x9a   :  { %267 = vperm.xlu1 %1493, %v1670_v22   ;;  %vm419_vm13 = vmor %vm319_vm9, %vm399_vm10  ;;  %v1830_v22 = vld [vmem:[%s2238_s0 + $0x80] sm:$0xff] }
  0x9b   :  { %1494 = vset.pattern.permute.xlu2 %v1533_v3  ;;  %vm318_vm14 = vmor %vm218_vm12, %vm298_vm11  ;;  %v1272_v63 = vsel %vm419_vm13, 1.0, %v1536_v47  ;;  %185 = vperm.xlu0 %1514, %v1830_v22  }
  0x9c   :  { %270 = vperm.xlu2 %1494, %v1711_v37   ;;  %v250_v57 = vpop.permute.xlu2 %249  ;;  %vm220_vm11 = vmor %vm120_vm7, %vm200_vm8 }
  0x9d   :  { %vm300_vm12 = vcmp.eq.s32.totalorder %v250_v57, %v1713_v38  ;;  %v516_v57 = vpack.c.bf16 %v502_v55, %v501_v54 }
  0x9e   :  { %v1780_v7 = vpop.permute.xlu0 %155 }
  0xa0   :  { %v344_v60 = vpop.permute.xlu1 %343 }
  0xa1   :  { %vm398_vm15 = vcmp.eq.s32.totalorder %v344_v60, %v1713_v38 }
  0xa2   :  { %vm418_vm0 = vmor %vm318_vm14, %vm398_vm15  ;;  %1495 = vset.pattern.permute.xlu1 %v1531_v0 }
  0xa3   :  { %v1271_v2 = vsel %vm418_vm0, 1.0, %v1536_v47  ;;  %370 = vperm.xlu1 %1495, %v1711_v37   ;;  %vm320_vm14 = vmor %vm220_vm11, %vm300_vm12  ;;  %1519 = vset.pattern.permute.xlu0 %v1531_v0  ;;  %v500_v37 = vld [vmem:[%s2241_s1 + $0x48] sm:$0xff] }
  0xa4   :  { %v477_v4 = vpack.c.bf16 %v1272_v63, %v1271_v2  ;;  %1496 = vset.pattern.permute.xlu2 %v1534_v5  ;;  %388 = vperm.xlu0 %1519, %v1843_v26   ;;  %v515_v40 = vpack.c.bf16 %v500_v37, %v499_v36 }
  0xa5   :  { %93 = vperm.xlu2 %1496, %v46_v62   ;;  %v353_v6 = vpop.permute.xlu2 %352 }
  0xa6   :  { %1308 = vmatmul.msk.bf16.gmra.mxu1 %vm634_vm1, %v477_v4  ;;  %vm401_vm9 = vcmp.eq.s32.totalorder %v353_v6, %v1713_v38  ;;  %1293 = vmatmul.msk.bf16.gmra.mxu0 %vm522_vm2, %v515_v40  ;;  %v569_v4 = vpop.f32.mrf.mxu0  ;;  %v506_v40 = vld [vmem:[%s2241_s1 + $0x78] sm:$0xff] }
  0xa7   :  { %v253_v12 = vpop.permute.xlu0 %252 }
  0xa8   :  { %vm301_vm6 = vcmp.eq.s32.totalorder %v253_v12, %v1713_v38 }
  0xa9   :  { %v73_v8 = vpop.permute.xlu1 %72 }
  0xaa   :  { %vm121_vm4 = vcmp.eq.s32.totalorder %v73_v8, %v1713_v38  ;;  %v1957_v8 = vld [vmem:[%s2243_s8] sm:$0xf]  ;;  %s1540_s8 = smov 32  }
  0xab   :  { %1497 = vset.pattern.permute.xlu1 %v1534_v5 }
  0xac   :  { %96 = vperm.xlu1 %1497, %v1699_v32   ;;  %1524 = vset.pattern.permute.xlu0 %v1533_v3 }
  0xad   :  { %1498 = vset.pattern.permute.xlu2 %v1532_v1  ;;  %291 = vperm.xlu0 %1524, %v1875_v35  }
  0xae   :  { %173 = vperm.xlu2 %1498, %v46_v62   ;;  %v1791_v10 = vpop.permute.xlu2 %78  ;;  %v571_v12 = vpop.f32.mrf.mxu0 }
  0xaf   :  { %v1836_v25 = vpop.permute.xlu0 %261 }
  0xb2   :  { %v153_v11 = vpop.permute.xlu1 %152 }
  0xb3   :  { %vm201_vm3 = vcmp.eq.s32.totalorder %v153_v11, %v1713_v38 }
  0xb4   :  { %1501 = vset.pattern.permute.xlu1 %v1533_v3  ;;  %vm221_vm5 = vmor %vm121_vm4, %vm201_vm3  ;;  %vm202_vm3 = vcmp.eq.s32.totalorder %v1780_v7, %v1713_v38 }
  0xb5   :  { %273 = vperm.xlu1 %1501, %v46_v62   ;;  %vm321_vm10 = vmor %vm221_vm5, %vm301_vm6  ;;  %1529 = vset.pattern.permute.xlu0 %v1534_v5 }
  0xb6   :  { %1502 = vset.pattern.permute.xlu2 %v1533_v3  ;;  %vm421_vm13 = vmor %vm321_vm10, %vm401_vm9  ;;  %vm123_vm9 = vcmp.eq.s32.totalorder %v1791_v10, %v1713_v38  ;;  %1294 = vmatmul.msk.bf16.gmra.mxu0 %vm522_vm2, %v516_v57 }
  0xb7   :  { %276 = vperm.xlu2 %1502, %v1699_v32   ;;  %v256_v14 = vpop.permute.xlu2 %255  ;;  %v1274_v19 = vsel %vm421_vm13, 1.0, %v1536_v47 }
  0xb8   :  { %vm302_vm5 = vcmp.eq.s32.totalorder %v256_v14, %v1713_v38  ;;  %v359_v29 = vpop.permute.xlu0 %358 }
  0xb9   :  { %vm403_vm12 = vcmp.eq.s32.totalorder %v359_v29, %v1713_v38  ;;  %v574_v29 = vpop.f32.mrf.mxu0 }
  0xbb   :  { %v350_v15 = vpop.permute.xlu1 %349 }
  0xbc   :  { %vm400_vm15 = vcmp.eq.s32.totalorder %v350_v15, %v1713_v38 }
  0xbd   :  { %vm420_vm0 = vmor %vm320_vm14, %vm400_vm15  ;;  %1503 = vset.pattern.permute.xlu1 %v1531_v0 }
  0xbe   :  { %v1273_v20 = vsel %vm420_vm0, 1.0, %v1536_v47  ;;  %373 = vperm.xlu1 %1503, %v46_v62  }
  0xbf   :  { %v478_v21 = vpack.c.bf16 %v1274_v19, %v1273_v20  ;;  %1504 = vset.pattern.permute.xlu2 %v1531_v0  ;;  %v517_v20 = vpack.c.bf16 %v504_v17, %v503_v16 }
  0xc0   :  { %376 = vperm.xlu2 %1504, %v1699_v32   ;;  %v356_v24 = vpop.permute.xlu2 %355  ;;  %v368_v53 = vpop.permute.xlu0 %367 }
  0xc1   :  { %1309 = vmatmul.msk.bf16.gmra.mxu1 %vm634_vm1, %v478_v21  ;;  %vm402_vm8 = vcmp.eq.s32.totalorder %v356_v24, %v1713_v38 }
  0xc4   :  { %v76_v23 = vpop.permute.xlu1 %75 }
  0xc5   :  { %vm122_vm4 = vcmp.eq.s32.totalorder %v76_v23, %v1713_v38 }
  0xc6   :  { %1505 = vset.pattern.permute.xlu1 %v1534_v5  ;;  %vm222_vm6 = vmor %vm122_vm4, %vm202_vm3  ;;  %1295 = vmatmul.msk.bf16.gmra.mxu0 %vm522_vm2, %v517_v20 }
  0xc7   :  { %102 = vperm.xlu1 %1505, %v1796_v13   ;;  %vm322_vm7 = vmor %vm222_vm6, %vm302_vm5  ;;  %vm304_vm5 = vcmp.eq.s32.totalorder %v1836_v25, %v1713_v38 }
  0xc8   :  { %1506 = vset.pattern.permute.xlu2 %v1532_v1  ;;  %vm422_vm11 = vmor %vm322_vm7, %vm402_vm8 }
  0xc9   :  { %179 = vperm.xlu2 %1506, %v1785_v9   ;;  %v1845_v27 = vpop.permute.xlu2 %84  ;;  %v1275_v32 = vsel %vm422_vm11, 1.0, %v1536_v47  ;;  %v1947_v2 = vpop.permute.xlu0 %176 }
  0xca   :  { %vm125_vm7 = vcmp.eq.s32.totalorder %v1845_v27, %v1713_v38 }
  0xcd   :  { %v159_v28 = vpop.permute.xlu1 %158 }
  0xce   :  { %vm203_vm10 = vcmp.eq.s32.totalorder %v159_v28, %v1713_v38 }
  0xcf   :  { %1507 = vset.pattern.permute.xlu1 %v1532_v1  ;;  %vm223_vm13 = vmor %vm123_vm9, %vm203_vm10 }
  0xd0   :  { %182 = vperm.xlu1 %1507, %v1796_v13  }
  0xd1   :  { %1508 = vset.pattern.permute.xlu2 %v1533_v3 }
  0xd2   :  { %279 = vperm.xlu2 %1508, %v1785_v9   ;;  %v1862_v31 = vpop.permute.xlu2 %164  ;;  %v91_v10 = vpop.permute.xlu0 %90 }
  0xd3   :  { %vm205_vm8 = vcmp.eq.s32.totalorder %v1862_v31, %v1713_v38 }
  0xd6   :  { %v259_v30 = vpop.permute.xlu1 %258 }
  0xd7   :  { %vm303_vm14 = vcmp.eq.s32.totalorder %v259_v30, %v1713_v38 }
  0xd8   :  { %vm323_vm15 = vmor %vm223_vm13, %vm303_vm14  ;;  %1510 = vset.pattern.permute.xlu1 %v1531_v0 }
  0xd9   :  { %vm423_vm0 = vmor %vm323_vm15, %vm403_vm12  ;;  %379 = vperm.xlu1 %1510, %v1785_v9  }
  0xda   :  { %v1276_v33 = vsel %vm423_vm0, 1.0, %v1536_v47  ;;  %1511 = vset.pattern.permute.xlu2 %v1531_v0  ;;  %vm225_vm12 = vmor %vm125_vm7, %vm205_vm8  ;;  %vm127_vm7 = vcmp.eq.s32.totalorder %v91_v10, %v1713_v38 }
  0xdb   :  { %v479_v34 = vpack.c.bf16 %v1276_v33, %v1275_v32  ;;  %382 = vperm.xlu2 %1511, %v1796_v13   ;;  %v362_v41 = vpop.permute.xlu2 %361  ;;  %v576_v33 = vpop.f32.mrf.mxu0 }
  0xdc   :  { %vm404_vm9 = vcmp.eq.s32.totalorder %v362_v41, %v1713_v38 }
  0xdd   :  { %1310 = vmatmul.msk.bf16.gmra.mxu1 %vm634_vm1, %v479_v34 }
  0xdf   :  { %v82_v39 = vpop.permute.xlu1 %81 }
  0xe0   :  { %vm124_vm4 = vcmp.eq.s32.totalorder %v82_v39, %v1713_v38  ;;  %v505_v39 = vld [vmem:[%s2241_s1 + $0x70] sm:$0xff] }
  0xe1   :  { %1512 = vset.pattern.permute.xlu1 %v1534_v5 }
  0xe2   :  { %105 = vperm.xlu1 %1512, %v1830_v22  }
  0xe3   :  { %1513 = vset.pattern.permute.xlu2 %v1534_v5 }
  0xe4   :  { %108 = vperm.xlu2 %1513, %v1843_v26   ;;  %v1897_v45 = vpop.permute.xlu2 %87 }
  0xe8   :  { %v162_v44 = vpop.permute.xlu1 %161 }
  0xe9   :  { %vm204_vm3 = vcmp.eq.s32.totalorder %v162_v44, %v1713_v38  ;;  %v518_v44 = vpack.c.bf16 %v506_v40, %v505_v39 }
  0xea   :  { %1515 = vset.pattern.permute.xlu1 %v1532_v1  ;;  %vm224_vm6 = vmor %vm124_vm4, %vm204_vm3  ;;  %vm126_vm3 = vcmp.eq.s32.totalorder %v1897_v45, %v1713_v38 }
  0xeb   :  { %188 = vperm.xlu1 %1515, %v1843_v26   ;;  %vm324_vm10 = vmor %vm224_vm6, %vm304_vm5  ;;  %1296 = vmatmul.msk.bf16.gmra.mxu0 %vm522_vm2, %v518_v44 }
  0xec   :  { %1516 = vset.pattern.permute.xlu2 %v1533_v3  ;;  %vm424_vm13 = vmor %vm324_vm10, %vm404_vm9  ;;  %vm406_vm9 = vcmp.eq.s32.totalorder %v368_v53, %v1713_v38  ;;  %v579_v53 = vpop.f32.mrf.mxu0 }
  0xed   :  { %285 = vperm.xlu2 %1516, %v1830_v22   ;;  %v1914_v50 = vpop.permute.xlu2 %170  ;;  %v1277_v59 = vsel %vm424_vm13, 1.0, %v1536_v47 }
  0xee   :  { %vm207_vm6 = vcmp.eq.s32.totalorder %v1914_v50, %v1713_v38  ;;  %v100_v50 = vpop.permute.xlu0 %99 }
  0xf1   :  { %v265_v49 = vpop.permute.xlu1 %264 }
  0xf2   :  { %vm305_vm11 = vcmp.eq.s32.totalorder %v265_v49, %v1713_v38 }
  0xf3   :  { %1517 = vset.pattern.permute.xlu1 %v1533_v3  ;;  %vm325_vm14 = vmor %vm225_vm12, %vm305_vm11 }
  0xf4   :  { %288 = vperm.xlu1 %1517, %v1843_v26   ;;  %vm227_vm12 = vmor %vm127_vm7, %vm207_vm6 }
  0xf5   :  { %1518 = vset.pattern.permute.xlu2 %v1531_v0 }
  0xf6   :  { %385 = vperm.xlu2 %1518, %v1830_v22   ;;  %v271_v62 = vpop.permute.xlu2 %270  ;;  %v283_v55 = vpop.permute.xlu0 %282 }
  0xf7   :  { %vm307_vm11 = vcmp.eq.s32.totalorder %v271_v62, %v1713_v38 }
  0xfa   :  { %v365_v56 = vpop.permute.xlu1 %364 }
  0xfb   :  { %vm405_vm15 = vcmp.eq.s32.totalorder %v365_v56, %v1713_v38 }
  0xfc   :  { %vm425_vm0 = vmor %vm325_vm14, %vm405_vm15  ;;  %1520 = vset.pattern.permute.xlu1 %v1534_v5 }
  0xfd   :  { %v1278_v60 = vsel %vm425_vm0, 1.0, %v1536_v47  ;;  %111 = vperm.xlu1 %1520, %v1875_v35   ;;  %vm327_vm14 = vmor %vm227_vm12, %vm307_vm11 }
  0xfe   :  { %v480_v61 = vpack.c.bf16 %v1278_v60, %v1277_v59  ;;  %1521 = vset.pattern.permute.xlu2 %v1534_v5  ;;  %v581_v59 = vpop.f32.mrf.mxu0 }
  0xff   :  { %114 = vperm.xlu2 %1521, %v53_v58   ;;  %v1952_v6 = vpop.permute.xlu2 %93 }
 0x100   :  { %1311 = vmatmul.msk.bf16.gmra.mxu1 %vm634_vm1, %v480_v61 }
 0x103   :  { %v168_v63 = vpop.permute.xlu1 %167 }
 0x104   :  { %vm206_vm4 = vcmp.eq.s32.totalorder %v168_v63, %v1713_v38 }
 0x105   :  { %1522 = vset.pattern.permute.xlu1 %v1532_v1  ;;  %vm226_vm8 = vmor %vm126_vm3, %vm206_vm4  ;;  %vm827_vm3 = vcmask 785408   ;;  %vm209_vm4 = vcmp.eq.s32.totalorder %v1947_v2, %v1713_v38 }
 0x106   :  { %191 = vperm.xlu1 %1522, %v1875_v35   ;;  %v584_v17 = vpop.f32.mrf.mxu0 }
 0x107   :  { %1523 = vset.pattern.permute.xlu2 %v1532_v1  ;;  %v1964_v1 = vperm.slane %v1957_v8, 0 }
 0x108   :  { %194 = vperm.xlu2 %1523, %v53_v58  }
 0x10a   :  { %v677_v7 = vpop.f32.mrf.mxu1 }
 0x10b   :  { %v678_v11 = vadd.f32 %v677_v7, %v569_v4  ;;  %v507_v7 = vld [vmem:[%s2241_s1 + $0x80] sm:$0xff] }
 0x10c   :  { %v268_v9 = vpop.permute.xlu1 %267 }
 0x10d   :  { %vm306_vm5 = vcmp.eq.s32.totalorder %v268_v9, %v1713_v38  ;;  %v728_v14 = vadd.f32 %v1964_v1, %v678_v11  ;;  %v508_v9 = vld [vmem:[%s2241_s1 + $0x88] sm:$0xff] }
 0x10e   :  { %1525 = vset.pattern.permute.xlu1 %v1533_v3  ;;  %vm326_vm10 = vmor %vm226_vm8, %vm306_vm5  ;;  %v174_v3 = vpop.permute.xlu2 %173  ;;  %vm128_vm8 = vcmp.eq.s32.totalorder %v1952_v6, %v1713_v38  ;;  %v519_v11 = vpack.c.bf16 %v508_v9, %v507_v7 }
 0x10f   :  { %294 = vperm.xlu1 %1525, %v53_v58   ;;  %vm426_vm13 = vmor %vm326_vm10, %vm406_vm9  ;;  %v748_v21 = vmax.f32 %v728_v14, 0.0  ;;  %vm208_vm9 = vcmp.eq.s32.totalorder %v174_v3, %v1713_v38 }
 0x110   :  { %1526 = vset.pattern.permute.xlu2 %v1531_v0  ;;  %v1279_v23 = vsel %vm426_vm13, 1.0, %v1536_v47  ;;  %vm228_vm13 = vmor %vm128_vm8, %vm208_vm9  ;;  %vm311_vm8 = vcmp.eq.s32.totalorder %v283_v55, %v1713_v38  ;;  %1297 = vmatmul.msk.bf16.gmra.mxu0 %vm522_vm2, %v519_v11  ;;  %v917_v55 = vld [vmem:[%s2238_s0 + $0xa0] sm:$0xff] }
 0x111   :  { %391 = vperm.xlu2 %1526, %v1875_v35  }
 0x112   :  { %v679_v13 = vpop.f32.mrf.mxu1 }
 0x113   :  { %v680_v15 = vadd.f32 %v679_v13, %v571_v12 }
 0x115   :  { %v729_v18 = vadd.f32 %v1964_v1, %v680_v15  ;;  %v371_v19 = vpop.permute.xlu1 %370 }
 0x116   :  { %vm407_vm15 = vcmp.eq.s32.totalorder %v371_v19, %v1713_v38  ;;  %v277_v27 = vpop.permute.xlu2 %276 }
 0x117   :  { %v749_v22 = vmax.f32 %v729_v18, 0.0  ;;  %vm427_vm0 = vmor %vm327_vm14, %vm407_vm15  ;;  %1527 = vset.pattern.permute.xlu1 %v1531_v0  ;;  %vm309_vm6 = vcmp.eq.s32.totalorder %v277_v27, %v1713_v38  ;;  %v186_v18 = vpop.permute.xlu0 %185 }
 0x118   :  { %v1280_v24 = vsel %vm427_vm0, 1.0, %v1536_v47  ;;  %394 = vperm.xlu1 %1527, %v53_v58  }
 0x119   :  { %v481_v25 = vpack.c.bf16 %v1280_v24, %v1279_v23  ;;  %v768_v26 = vpack.c.bf16 %v749_v22, %v748_v21  ;;  %1528 = vset.pattern.permute.xlu2 %v1534_v5  ;;  %v586_v23 = vpop.f32.mrf.mxu0 }
 0x11a   :  { %922 = vperm.xlu2 %1528, %v917_v55  }
 0x11b   :  { %1312 = vmatmul.msk.bf16.gmra.mxu1 %vm634_vm1, %v481_v25  ;;  %1341 = vmatmul.msk.bf16.vlgmr.msra.gmra.mxu2 %vm827_vm3, %v768_v26 }
 0x11e   :  { %v97_v28 = vpop.permute.xlu1 %96  ;;  %v377_v30 = vpop.permute.xlu2 %376 }
 0x11f   :  { %vm129_vm5 = vcmp.eq.s32.totalorder %v97_v28, %v1713_v38  ;;  %vm409_vm11 = vcmp.eq.s32.totalorder %v377_v30, %v1713_v38  ;;  %v389_v27 = vpop.permute.xlu0 %388 }
 0x120   :  { %1530 = vset.pattern.permute.xlu1 %v1534_v5  ;;  %vm229_vm7 = vmor %vm129_vm5, %vm209_vm4 }
 0x121   :  { %vm329_vm10 = vmor %vm229_vm7, %vm309_vm6 }
 0x122   :  { %vm429_vm14 = vmor %vm329_vm10, %vm409_vm11  ;;  %vm130_vm10 = vcmp.eq.s32.totalorder %v100_v50, %v1713_v38 }
 0x123   :  { %v682_v0 = vpop.f32.mrf.mxu1  ;;  %v1282_v46 = vsel %vm429_vm14, 1.0, %v1536_v47 }
 0x124   :  { %v683_v32 = vadd.f32 %v682_v0, %v574_v29 }
 0x126   :  { %v730_v5 = vadd.f32 %v1964_v1, %v683_v32  ;;  %v180_v37 = vpop.permute.xlu2 %179  ;;  %v510_v32 = vld [vmem:[%s2241_s1 + $0x98] sm:$0xff] }
 0x127   :  { %v274_v31 = vpop.permute.xlu1 %273  ;;  %vm210_vm9 = vcmp.eq.s32.totalorder %v180_v37, %v1713_v38  ;;  %v292_v44 = vpop.permute.xlu0 %291 }
 0x128   :  { %vm308_vm12 = vcmp.eq.s32.totalorder %v274_v31, %v1713_v38  ;;  %v750_v41 = vmax.f32 %v730_v5, 0.0  ;;  %vm230_vm14 = vmor %vm130_vm10, %vm210_vm9  ;;  %v509_v31 = vld [vmem:[%s2241_s1 + $0x90] sm:$0xff] }
 0x129   :  { %vm328_vm15 = vmor %vm228_vm13, %vm308_vm12 }
 0x12b   :  { %v684_v34 = vpop.f32.mrf.mxu1 }
 0x12c   :  { %v685_v35 = vadd.f32 %v684_v34, %v576_v33  ;;  %v520_v33 = vpack.c.bf16 %v510_v32, %v509_v31 }
 0x12e   :  { %v731_v36 = vadd.f32 %v1964_v1, %v685_v35  ;;  %v280_v51 = vpop.permute.xlu2 %279  ;;  %1298 = vmatmul.msk.bf16.gmra.mxu0 %vm522_vm2, %v520_v33 }
 0x12f   :  { %vm310_vm13 = vcmp.eq.s32.totalorder %v280_v51, %v1713_v38 }
 0x130   :  { %v751_v42 = vmax.f32 %v731_v36, 0.0  ;;  %v374_v43 = vpop.permute.xlu1 %373 }
 0x131   :  { %vm408_vm0 = vcmp.eq.s32.totalorder %v374_v43, %v1713_v38 }
 0x132   :  { %vm428_vm4 = vmor %vm328_vm15, %vm408_vm0  ;;  %v769_v45 = vpack.c.bf16 %v751_v42, %v750_v41  ;;  %v589_v41 = vpop.f32.mrf.mxu0 }
 0x133   :  { %v1281_v48 = vsel %vm428_vm4, 1.0, %v1536_v47  ;;  %vm330_vm0 = vmor %vm230_vm14, %vm310_vm13 }
 0x134   :  { %v482_v49 = vpack.c.bf16 %v1282_v46, %v1281_v48  ;;  %1342 = vmatmul.msk.bf16.gmra.mxu2 %vm827_vm3, %v769_v45  ;;  %v919_v48 = vld [vmem:[%s2238_s0 + $0xb0] sm:$0xff] }
 0x135   :  { %928 = vperm.xlu1 %1530, %v919_v48  }
 0x136   :  { %1313 = vmatmul.msk.bf16.gmra.mxu1 %vm634_vm1, %v482_v49  ;;  %v383_v56 = vpop.permute.xlu2 %382 }
 0x137   :  { %vm411_vm11 = vcmp.eq.s32.totalorder %v383_v56, %v1713_v38 }
 0x139   :  { %v103_v52 = vpop.permute.xlu1 %102 }
 0x13a   :  { %vm131_vm6 = vcmp.eq.s32.totalorder %v103_v52, %v1713_v38  ;;  %v591_v49 = vpop.f32.mrf.mxu0 }
 0x13e   :  { %v687_v54 = vpop.f32.mrf.mxu1  ;;  %v109_v10 = vpop.permute.xlu2 %108 }
 0x13f   :  { %v688_v58 = vadd.f32 %v687_v54, %v579_v53 }
 0x141   :  { %v732_v61 = vadd.f32 %v1964_v1, %v688_v58 }
 0x142   :  { %v183_v57 = vpop.permute.xlu1 %182 }
 0x143   :  { %vm211_vm5 = vcmp.eq.s32.totalorder %v183_v57, %v1713_v38  ;;  %v752_v2 = vmax.f32 %v732_v61, 0.0 }
 0x144   :  { %vm231_vm7 = vmor %vm131_vm6, %vm211_vm5  ;;  %vm212_vm6 = vcmp.eq.s32.totalorder %v186_v18, %v1713_v38 }
 0x145   :  { %vm331_vm12 = vmor %vm231_vm7, %vm311_vm8 }
 0x146   :  { %v689_v60 = vpop.f32.mrf.mxu1  ;;  %vm431_vm15 = vmor %vm331_vm12, %vm411_vm11  ;;  %vm133_vm12 = vcmp.eq.s32.totalorder %v109_v10, %v1713_v38 }
 0x147   :  { %v690_v62 = vadd.f32 %v689_v60, %v581_v59  ;;  %v1284_v3 = vsel %vm431_vm15, 1.0, %v1536_v47  ;;  %v286_v16 = vpop.permute.xlu2 %285  ;;  %vm413_vm15 = vcmp.eq.s32.totalorder %v389_v27, %v1713_v38 }
 0x148   :  { %vm312_vm8 = vcmp.eq.s32.totalorder %v286_v16, %v1713_v38 }
 0x149   :  { %v733_v63 = vadd.f32 %v1964_v1, %v690_v62 }
 0x14b   :  { %v753_v4 = vmax.f32 %v733_v63, 0.0  ;;  %v380_v6 = vpop.permute.xlu1 %379  ;;  %v920_v63 = vld [vmem:[%s2238_s0 + $0xb8] sm:$0xff] }
 0x14c   :  { %vm410_vm4 = vcmp.eq.s32.totalorder %v380_v6, %v1713_v38  ;;  %931 = vperm.xlu2 %1528, %v920_v63   ;;  %v918_v6 = vld [vmem:[%s2238_s0 + $0xa8] sm:$0xff]  ;;  %s1537_s0 = smov 8  }
 0x14d   :  { %vm430_vm5 = vmor %vm330_vm0, %vm410_vm4  ;;  %v770_v12 = vpack.c.bf16 %v753_v4, %v752_v2  ;;  %v594_v2 = vpop.f32.mrf.mxu0  ;;  %925 = vperm.xlu0 %1529, %v918_v6  }
 0x14e   :  { %v1283_v13 = vsel %vm430_vm5, 1.0, %v1536_v47 }
 0x14f   :  { %v483_v14 = vpack.c.bf16 %v1284_v3, %v1283_v13  ;;  %1343 = vmatmul.msk.bf16.gmra.mxu2 %vm827_vm3, %v770_v12 }
 0x150   :  { %v386_v22 = vpop.permute.xlu2 %385 }
 0x151   :  { %1314 = vmatmul.msk.bf16.gmra.mxu1 %vm634_vm1, %v483_v14  ;;  %vm412_vm11 = vcmp.eq.s32.totalorder %v386_v22, %v1713_v38 }
 0x154   :  { %v106_v15 = vpop.permute.xlu1 %105 }
 0x155   :  { %vm132_vm7 = vcmp.eq.s32.totalorder %v106_v15, %v1713_v38  ;;  %v596_v10 = vpop.f32.mrf.mxu0  ;;  %v2087_v15 = vperm.slane %v1957_v8, 1 }
 0x156   :  { %vm232_vm9 = vmor %vm132_vm7, %vm212_vm6 }
 0x157   :  { %vm332_vm10 = vmor %vm232_vm9, %vm312_vm8  ;;  %vm314_vm9 = vcmp.eq.s32.totalorder %v292_v44, %v1713_v38 }
 0x158   :  { %vm432_vm14 = vmor %vm332_vm10, %vm412_vm11 }
 0x159   :  { %v1285_v5 = vsel %vm432_vm14, 1.0, %v1536_v47  ;;  %v115_v39 = vpop.permute.xlu2 %114 }
 0x15a   :  { %v692_v19 = vpop.f32.mrf.mxu1  ;;  %vm135_vm10 = vcmp.eq.s32.totalorder %v115_v39, %v1713_v38 }
 0x15b   :  { %v693_v21 = vadd.f32 %v692_v19, %v584_v17 }
 0x15d   :  { %v189_v20 = vpop.permute.xlu1 %188  ;;  %v734_v25 = vadd.f32 %v1964_v1, %v693_v21 }
 0x15e   :  { %vm213_vm13 = vcmp.eq.s32.totalorder %v189_v20, %v1713_v38  ;;  %v599_v20 = vpop.f32.mrf.mxu0 }
 0x15f   :  { %v754_v0 = vmax.f32 %v734_v25, 0.0  ;;  %vm233_vm0 = vmor %vm133_vm12, %vm213_vm13 }
 0x162   :  { %v694_v24 = vpop.f32.mrf.mxu1  ;;  %v195_v42 = vpop.permute.xlu2 %194 }
 0x163   :  { %v695_v26 = vadd.f32 %v694_v24, %v586_v23  ;;  %vm215_vm11 = vcmp.eq.s32.totalorder %v195_v42, %v1713_v38 }
 0x165   :  { %v735_v28 = vadd.f32 %v1964_v1, %v695_v26 }
 0x166   :  { %v289_v29 = vpop.permute.xlu1 %288  ;;  %v601_v25 = vpop.f32.mrf.mxu0 }
 0x167   :  { %v755_v30 = vmax.f32 %v735_v28, 0.0  ;;  %vm313_vm4 = vcmp.eq.s32.totalorder %v289_v29, %v1713_v38 }
 0x168   :  { %vm333_vm5 = vmor %vm233_vm0, %vm313_vm4 }
 0x169   :  { %vm433_vm6 = vmor %vm333_vm5, %vm413_vm15  ;;  %v771_v34 = vpack.c.bf16 %v755_v30, %v754_v0 }
 0x16a   :  { %v1286_v35 = vsel %vm433_vm6, 1.0, %v1536_v47  ;;  %vm235_vm15 = vmor %vm135_vm10, %vm215_vm11  ;;  %vm991_vm11 = vcmask 64512  }
 0x16b   :  { %v484_v36 = vpack.c.bf16 %v1286_v35, %v1285_v5  ;;  %1344 = vmatmul.msk.bf16.gmra.mxu2 %vm827_vm3, %v771_v34  ;;  %v392_v50 = vpop.permute.xlu2 %391 }
 0x16c   :  { %vm414_vm13 = vcmp.eq.s32.totalorder %v392_v50, %v1713_v38 }
 0x16d   :  { %1315 = vmatmul.msk.bf16.gmra.mxu1 %vm634_vm1, %v484_v36 }
 0x16e   :  { %v604_v34 = vpop.f32.mrf.mxu0 }
 0x16f   :  { %v112_v37 = vpop.permute.xlu1 %111 }
 0x170   :  { %vm134_vm2 = vcmp.eq.s32.totalorder %v112_v37, %v1713_v38 }
 0x176   :  { %v606_v39 = vpop.f32.mrf.mxu0 }
 0x178   :  { %v192_v40 = vpop.permute.xlu1 %191 }
 0x179   :  { %vm214_vm7 = vcmp.eq.s32.totalorder %v192_v40, %v1713_v38 }
 0x17a   :  { %vm234_vm8 = vmor %vm134_vm2, %vm214_vm7  ;;  %vm955_vm7 = vcmask 1041408  }
 0x17b   :  { %vm334_vm12 = vmor %vm234_vm8, %vm314_vm9  ;;  %vm948_vm9 = vcmask 31744  }
 0x17c   :  { %vm434_vm0 = vmor %vm334_vm12, %vm414_vm13  ;;  %vm1024_vm12 = vcmask 130048   ;;  %vm1026_vm13 = vcmask 195584  }
 0x17d   :  { %v697_v43 = vpop.f32.mrf.mxu1  ;;  %v1287_v60 = vsel %vm434_vm0, 1.0, %v1536_v47  ;;  %vm1033_vm0 = vcmask 457728  }
 0x17e   :  { %v698_v46 = vadd.f32 %v697_v43, %v589_v41 }
 0x180   :  { %v736_v52 = vadd.f32 %v1964_v1, %v698_v46 }
 0x181   :  { %v295_v45 = vpop.permute.xlu1 %294 }
 0x182   :  { %vm315_vm14 = vcmp.eq.s32.totalorder %v295_v45, %v1713_v38  ;;  %v756_v56 = vmax.f32 %v736_v52, 0.0 }
 0x183   :  { %vm335_vm4 = vmor %vm235_vm15, %vm315_vm14  ;;  %vm1028_vm14 = vcmask 261120   ;;  %vm1031_vm15 = vcmask 392192  }
 0x185   :  { %v699_v51 = vpop.f32.mrf.mxu1 }
 0x186   :  { %v700_v53 = vadd.f32 %v699_v51, %v591_v49 }
 0x188   :  { %v737_v54 = vadd.f32 %v1964_v1, %v700_v53 }
 0x18a   :  { %v757_v57 = vmax.f32 %v737_v54, 0.0  ;;  %v395_v58 = vpop.permute.xlu1 %394 }
 0x18b   :  { %vm415_vm5 = vcmp.eq.s32.totalorder %v395_v58, %v1713_v38 }
 0x18c   :  { %vm435_vm6 = vmor %vm335_vm4, %vm415_vm5  ;;  %v772_v59 = vpack.c.bf16 %v757_v57, %v756_v56  ;;  %vm1098_vm4 = vcmask 654336   ;;  %vm1100_vm5 = vcmask 916480  }
 0x18d   :  { %v1288_v61 = vsel %vm435_vm6, 1.0, %v1536_v47  ;;  %v609_v50 = vpop.f32.mrf.mxu0  ;;  %vm1263_vm6 = vcmask 523648  }
 0x18e   :  { %v485_v62 = vpack.c.bf16 %v1288_v61, %v1287_v60  ;;  %1345 = vmatmul.msk.bf16.gmra.mxu2 %vm827_vm3, %v772_v59 }
 0x190   :  { %1316 = vmatmul.msk.bf16.gmra.mxu1 %vm634_vm1, %v485_v62 }
 0x195   :  { %v611_v55 = vpop.f32.mrf.mxu0 }
 0x198   :  { %v702_v4 = vpop.f32.mrf.mxu1 }
 0x199   :  { %v703_v7 = vadd.f32 %v702_v4, %v594_v2  ;;  %v947_v4 = vld [vmem:[%s2244_s5] sm:$0x3]  ;;  %s1545_s5 = smov 112  }
 0x19a   :  { %v957_v6 = vsel %vm955_vm7, %v947_v4, 0 }
 0x19b   :  { %v738_v12 = vadd.f32 %v1964_v1, %v703_v7  ;;  %966 = vmatpush.bf16.msrb.mxu3 %v957_v6 }
 0x19d   :  { %v758_v14 = vmax.f32 %v738_v12, 0.0 }
 0x19e   :  { %v2082_v9 = vpop.f32.mrf.mxu2 }
 0x1a0   :  { %v704_v11 = vpop.f32.mrf.mxu1 }
 0x1a1   :  { %v705_v3 = vadd.f32 %v704_v11, %v596_v10 }
 0x1a3   :  { %v739_v13 = vadd.f32 %v1964_v1, %v705_v3 }
 0x1a5   :  { %v759_v16 = vmax.f32 %v739_v13, 0.0 }
 0x1a6   :  { %v869_v17 = vpop.f32.mrf.mxu2 }
 0x1a7   :  { %v870_v18 = vadd.f32 %v869_v17, %v2087_v15  ;;  %v773_v19 = vpack.c.bf16 %v759_v16, %v758_v14 }
 0x1a9   :  { %996 = vrot.lane.b32.xlu1 %v870_v18, %s1537_s0  ;;  %1346 = vmatmul.msk.bf16.gmra.mxu2 %vm827_vm3, %v773_v19 }
 0x1ab   :  { %v614_v7 = vpop.f32.mrf.mxu0 }
 0x1b3   :  { %v707_v21 = vpop.f32.mrf.mxu1  ;;  %v616_v13 = vpop.f32.mrf.mxu0 }
 0x1b4   :  { %v708_v23 = vadd.f32 %v707_v21, %v599_v20 }
 0x1b6   :  { %v740_v27 = vadd.f32 %v1964_v1, %v708_v23  ;;  %v923_v23 = vpop.permute.xlu2 %922 }
 0x1b7   :  { %v872_v22 = vpop.f32.mrf.mxu2  ;;  %vm933_vm2 = vcmp.eq.s32.totalorder %v923_v23, %v1713_v38 }
 0x1b8   :  { %v873_v24 = vadd.f32 %v872_v22, %v2087_v15  ;;  %v760_v30 = vmax.f32 %v740_v27, 0.0 }
 0x1ba   :  { %1000 = vrot.lane.b32.xlu2 %v873_v24, %s1538_s23 }
 0x1bb   :  { %v709_v26 = vpop.f32.mrf.mxu1 }
 0x1bc   :  { %v710_v28 = vadd.f32 %v709_v26, %v601_v25  ;;  %v1351_v25 = vsel %vm933_vm2, 1.0, %v1536_v47 }
 0x1be   :  { %v741_v29 = vadd.f32 %v1964_v1, %v710_v28 }
 0x1bf   :  { %v874_v0 = vpop.f32.mrf.mxu2  ;;  %v926_v22 = vpop.permute.xlu0 %925 }
 0x1c0   :  { %v761_v31 = vmax.f32 %v741_v29, 0.0  ;;  %v875_v32 = vadd.f32 %v874_v0, %v2087_v15  ;;  %vm934_vm8 = vcmp.eq.s32.totalorder %v926_v22, %v1713_v38  ;;  %v932_v29 = vpop.permute.xlu2 %931  ;;  %v929_v0 = vpop.permute.xlu1 %928 }
 0x1c1   :  { %v1352_v26 = vsel %vm934_vm8, 1.0, %v1536_v47  ;;  %vm935_vm10 = vcmp.eq.s32.totalorder %v929_v0, %v1713_v38  ;;  %v1425_v0 = vld [vmem:[%s2245_s6 + $0x30] sm:$0xff] }
 0x1c2   :  { %1004 = vrot.lane.b32.xlu0 %v875_v32, %s1539_s24  ;;  %v774_v33 = vpack.c.bf16 %v761_v31, %v760_v30  ;;  %v945_v27 = vpack.c.bf16 %v1352_v26, %v1351_v25 }
 0x1c4   :  { %1347 = vmatmul.msk.bf16.gmra.mxu2 %vm827_vm3, %v774_v33  ;;  %v1353_v33 = vsel %vm935_vm10, 1.0, %v1536_v47 }
 0x1ce   :  { %v712_v5 = vpop.f32.mrf.mxu1 }
 0x1cf   :  { %v713_v36 = vadd.f32 %v712_v5, %v604_v34 }
 0x1d1   :  { %v742_v41 = vadd.f32 %v1964_v1, %v713_v36 }
 0x1d2   :  { %v877_v35 = vpop.f32.mrf.mxu2 }
 0x1d3   :  { %v878_v37 = vadd.f32 %v877_v35, %v2087_v15  ;;  %v762_v45 = vmax.f32 %v742_v41, 0.0 }
 0x1d5   :  { %1008 = vrot.lane.b32.xlu0 %v878_v37, %s1540_s8 }
 0x1d6   :  { %v714_v40 = vpop.f32.mrf.mxu1 }
 0x1d7   :  { %v715_v42 = vadd.f32 %v714_v40, %v606_v39 }
 0x1d9   :  { %v743_v43 = vadd.f32 %v1964_v1, %v715_v42 }
 0x1da   :  { %v879_v44 = vpop.f32.mrf.mxu2 }
 0x1db   :  { %v763_v46 = vmax.f32 %v743_v43, 0.0  ;;  %v880_v48 = vadd.f32 %v879_v44, %v2087_v15 }
 0x1dd   :  { %1012 = vrot.lane.b32.xlu1 %v880_v48, %s1541_s25  ;;  %v775_v49 = vpack.c.bf16 %v763_v46, %v762_v45 }
 0x1df   :  { %1348 = vmatmul.msk.bf16.gmra.mxu2 %vm827_vm3, %v775_v49 }
 0x1ea   :  { %v717_v51 = vpop.f32.mrf.mxu1 }
 0x1eb   :  { %v718_v53 = vadd.f32 %v717_v51, %v609_v50 }
 0x1ed   :  { %v744_v57 = vadd.f32 %v1964_v1, %v718_v53 }
 0x1ee   :  { %v882_v52 = vpop.f32.mrf.mxu2 }
 0x1ef   :  { %v883_v54 = vadd.f32 %v882_v52, %v2087_v15  ;;  %v764_v61 = vmax.f32 %v744_v57, 0.0 }
 0x1f1   :  { %1016 = vrot.lane.b32.xlu0 %v883_v54, %s1542_s26 }
 0x1f2   :  { %v719_v56 = vpop.f32.mrf.mxu1 }
 0x1f3   :  { %v720_v58 = vadd.f32 %v719_v56, %v611_v55  ;;  %v868_v55 = vadd.f32 %v2082_v9, %v2087_v15 }
 0x1f5   :  { %v745_v59 = vadd.f32 %v1964_v1, %v720_v58 }
 0x1f6   :  { %v884_v60 = vpop.f32.mrf.mxu2 }
 0x1f7   :  { %v765_v62 = vmax.f32 %v745_v59, 0.0  ;;  %v885_v63 = vadd.f32 %v884_v60, %v2087_v15 }
 0x1f9   :  { %1020 = vrot.lane.b32.xlu0 %v885_v63, %s1543_s27  ;;  %v776_v2 = vpack.c.bf16 %v765_v62, %v764_v61 }
 0x1fb   :  { %1349 = vmatmul.msk.bf16.gmra.mxu2 %vm827_vm3, %v776_v2 }
 0x20d   :  { %v722_v10 = vpop.f32.mrf.mxu1 }
 0x20e   :  { %v723_v12 = vadd.f32 %v722_v10, %v614_v7 }
 0x210   :  { %v746_v16 = vadd.f32 %v1964_v1, %v723_v12 }
 0x211   :  { %v887_v11 = vpop.f32.mrf.mxu2 }
 0x212   :  { %v888_v3 = vadd.f32 %v887_v11, %v2087_v15  ;;  %v766_v19 = vmax.f32 %v746_v16, 0.0 }
 0x214   :  { %1036 = vrot.lane.b32.xlu1 %v888_v3, %s1544_s30  ;;  %v1001_v58 = vpop.permute.xlu2 %1000 }
 0x215   :  { %v724_v14 = vpop.f32.mrf.mxu1 }
 0x216   :  { %v725_v17 = vadd.f32 %v724_v14, %v616_v13 }
 0x218   :  { %v747_v18 = vadd.f32 %v1964_v1, %v725_v17 }
 0x219   :  { %v2121_v24 = vpop.f32.mrf.mxu2 }
 0x21a   :  { %v767_v20 = vmax.f32 %v747_v18, 0.0  ;;  %v890_v7 = vadd.f32 %v2121_v24, %v2087_v15 }
 0x21b   :  { %v997_v51 = vpop.permute.xlu1 %996 }
 0x21c   :  { %v777_v21 = vpack.c.bf16 %v767_v20, %v766_v19  ;;  %v1023_v56 = vsel %vm991_vm11, %v868_v55, %v997_v51 }
 0x21d   :  { %v1025_v59 = vsel %vm1024_vm12, %v1023_v56, %v1001_v58  ;;  %v1126_v56 = vperm.slane %v1957_v8, 2 }
 0x21e   :  { %1350 = vmatmul.msk.bf16.vlgmr.msra.gmra.mxu3 %vm827_vm3, %v777_v21  ;;  %vm936_vm3 = vcmp.eq.s32.totalorder %v932_v29, %v1713_v38 }
 0x21f   :  { %v1354_v32 = vsel %vm936_vm3, 1.0, %v1536_v47 }
 0x220   :  { %v946_v34 = vpack.c.bf16 %v1354_v32, %v1353_v33  ;;  %v1422_v32 = vld [vmem:[%s2245_s6 + $0x18] sm:$0xff]  ;;  %v1421_v33 = vld [vmem:[%s2245_s6 + $0x10] sm:$0xff] }
 0x22c   :  { %v892_v1 = vpop.f32.mrf.mxu2 }
 0x22d   :  { %v893_v28 = vadd.f32 %v892_v1, %v2087_v15 }
 0x22e   :  { %1355 = vmatmul.msk.bf16.vlgmr.msrb.gmra.mxu3 %vm948_vm9, %v945_v27 }
 0x22f   :  { %1040 = vrot.lane.b32.xlu1 %v893_v28, %s1537_s0 }
 0x234   :  { %v894_v30 = vpop.f32.mrf.mxu2  ;;  %v1005_v46 = vpop.permute.xlu0 %1004 }
 0x235   :  { %v895_v31 = vadd.f32 %v894_v30, %v2087_v15  ;;  %v1027_v60 = vsel %vm1026_vm13, %v1025_v59, %v1005_v46  ;;  %v1424_v30 = vld [vmem:[%s2245_s6 + $0x28] sm:$0xff] }
 0x237   :  { %1044 = vrot.lane.b32.xlu0 %v895_v31, %s1538_s23  ;;  %v1423_v31 = vld [vmem:[%s2245_s6 + $0x20] sm:$0xff] }
 0x23e   :  { %1356 = vmatmul.msk.bf16.gmra.mxu3 %vm948_vm9, %v946_v34  ;;  %v1420_v34 = vld [vmem:[%s2245_s6 + $0x8] sm:$0xff] }
 0x247   :  { %v897_v5 = vpop.f32.mrf.mxu2  ;;  %v1009_v50 = vpop.permute.xlu0 %1008 }
 0x248   :  { %v898_v35 = vadd.f32 %v897_v5, %v2087_v15  ;;  %v1029_v62 = vsel %vm1028_vm14, %v1027_v60, %v1009_v50  ;;  %v1419_v5 = vld [vmem:[%s2245_s6] sm:$0xff] }
 0x24a   :  { %1051 = vrot.lane.b32.xlu1 %v898_v35, %s1545_s5  ;;  %v1429_v35 = vld [vmem:[%s2245_s6 + $0x50] sm:$0xff] }
 0x24f   :  { %v899_v36 = vpop.f32.mrf.mxu2  ;;  %v1013_v54 = vpop.permute.xlu1 %1012 }
 0x250   :  { %v900_v38 = vadd.f32 %v899_v36, %v2087_v15  ;;  %v1030_v9 = vsel %vm634_vm1, %v1029_v62, %v1013_v54  ;;  %v1428_v36 = vld [vmem:[%s2245_s6 + $0x48] sm:$0xff] }
 0x252   :  { %1055 = vrot.lane.b32.xlu2 %v900_v38, %s1544_s30  ;;  %v1427_v38 = vld [vmem:[%s2245_s6 + $0x40] sm:$0xff] }
 0x262   :  { %v2140_v37 = vpop.f32.mrf.mxu2 }
 0x263   :  { %v1017_v53 = vpop.permute.xlu0 %1016  ;;  %v903_v22 = vadd.f32 %v2140_v37, %v2087_v15 }
 0x264   :  { %v1032_v2 = vsel %vm1031_vm15, %v1030_v9, %v1017_v53  ;;  %v1430_v53 = vld [vmem:[%s2247_s7] sm:$0xff] }
 0x26a   :  { %v904_v39 = vpop.f32.mrf.mxu2 }
 0x26b   :  { %v905_v47 = vadd.f32 %v904_v39, %v2087_v15  ;;  %v1021_v63 = vpop.permute.xlu0 %1020 }
 0x26c   :  { %v1034_v6 = vsel %vm1033_vm0, %v1032_v2, %v1021_v63  ;;  %v1228_v63 = vperm.slane %v1957_v8, 3 }
 0x26d   :  { %1059 = vrot.lane.b32.xlu2 %v905_v47, %s1537_s0 }
 0x27e   :  { %v907_v40 = vpop.f32.mrf.mxu2 }
 0x27f   :  { %v908_v41 = vadd.f32 %v907_v40, %v2087_v15 }
 0x281   :  { %1063 = vrot.lane.b32.xlu2 %v908_v41, %s1538_s23 }
 0x286   :  { %v909_v42 = vpop.f32.mrf.mxu2  ;;  %v1037_v61 = vpop.permute.xlu1 %1036 }
 0x287   :  { %v910_v43 = vadd.f32 %v909_v42, %v2087_v15  ;;  %v1047_v12 = vsel %vm991_vm11, %v1037_v61, %v890_v7 }
 0x289   :  { %1067 = vrot.lane.b32.xlu2 %v910_v43, %s1539_s24 }
 0x2a1   :  { %v912_v44 = vpop.f32.mrf.mxu3  ;;  %v1041_v10 = vpop.permute.xlu1 %1040 }
 0x2a2   :  { %v913_v45 = vadd.f32 %v912_v44, %v2087_v15  ;;  %v1048_v3 = vsel %vm1024_vm12, %v1047_v12, %v1041_v10 }
 0x2a4   :  { %1071 = vrot.lane.b32.xlu1 %v913_v45, %s1540_s8 }
 0x2a9   :  { %v914_v48 = vpop.f32.mrf.mxu3  ;;  %v1045_v11 = vpop.permute.xlu0 %1044 }
 0x2aa   :  { %v915_v49 = vadd.f32 %v914_v48, %v2087_v15  ;;  %v1049_v13 = vsel %vm1026_vm13, %v1048_v3, %v1045_v11  ;;  %v1426_v15 = vld [vmem:[%s2245_s6 + $0x38] sm:$0xff] }
 0x2ab   :  { %1196 = vmatpush.bf16.msra.mxu3 %v1426_v15 }
 0x2ac   :  { %1075 = vrot.lane.b32.xlu2 %v915_v49, %s1541_s25  ;;  %v1056_v16 = vpop.permute.xlu2 %1055 }
 0x2af   :  { %1197 = vmatpush.bf16.msra.mxu3 %v1425_v0 }
 0x2b1   :  { %v2152_v52 = vpop.f32.mrf.mxu3 }
 0x2b3   :  { %1198 = vmatpush.bf16.msra.mxu3 %v1424_v30 }
 0x2b7   :  { %1199 = vmatpush.bf16.msra.mxu3 %v1423_v31 }
 0x2b9   :  { %v970_v57 = vpop.f32.mrf.mxu3 }
 0x2ba   :  { %979 = vrot.lane.b32.xlu0 %v970_v57, %s1546_s10 }
 0x2bb   :  { %1200 = vmatpush.bf16.msra.mxu3 %v1422_v32 }
 0x2bc   :  { %v1052_v19 = vpop.permute.xlu1 %1051 }
 0x2bd   :  { %v1078_v21 = vsel %vm991_vm11, %v1052_v19, %v1056_v16 }
 0x2be   :  { %v1079_v23 = vsel %vm1024_vm12, %v1078_v21, %v903_v22 }
 0x2bf   :  { %1201 = vmatpush.bf16.msra.mxu3 %v1421_v33 }
 0x2c1   :  { %v973_v4 = vpop.f32.mrf.mxu3 }
 0x2c2   :  { %983 = vrot.lane.b32.xlu1 %v973_v4, %s1537_s0  ;;  %1086 = vrot.lane.b32.xlu0 %v1034_v6, %s1538_s23 }
 0x2c3   :  { %1202 = vmatpush.bf16.msra.mxu3 %v1420_v34 }
 0x2c7   :  { %v1060_v17 = vpop.permute.xlu2 %1059  ;;  %1203 = vmatpush.bf16.msra.mxu3 %v1419_v5 }
 0x2c8   :  { %v1080_v24 = vsel %vm1026_vm13, %v1079_v23, %v1060_v17 }
 0x2c9   :  { %v975_v14 = vpop.f32.mrf.mxu3 }
 0x2ca   :  { %1090 = vrot.lane.b32.xlu1 %v1049_v13, %s1547_s11  ;;  %987 = vrot.lane.b32.xlu2 %v975_v14, %s1548_s12 }
 0x2cb   :  { %1214 = vmatpush.bf16.msrb.mxu3 %v1429_v35 }
 0x2cf   :  { %1215 = vmatpush.bf16.msrb.mxu3 %v1428_v36 }
 0x2d3   :  { %1216 = vmatpush.bf16.msrb.mxu3 %v1427_v38 }
 0x2db   :  { %v1064_v18 = vpop.permute.xlu2 %1063 }
 0x2dc   :  { %v1081_v25 = vsel %vm1028_vm14, %v1080_v24, %v1064_v18 }
 0x2e3   :  { %v1068_v20 = vpop.permute.xlu2 %1067 }
 0x2e4   :  { %v1082_v26 = vsel %vm634_vm1, %v1081_v25, %v1068_v20  ;;  %vm993_vm1 = vcmask 97280  }
 0x306   :  { %v1076_v1 = vpop.permute.xlu2 %1075 }
 0x316   :  { %v1072_v27 = vpop.permute.xlu1 %1071 }
 0x317   :  { %v1083_v28 = vsel %vm1031_vm15, %v1082_v26, %v1072_v27 }
 0x318   :  { %v1084_v29 = vsel %vm1033_vm0, %v1083_v28, %v1076_v1 }
 0x319   :  { %1094 = vrot.lane.b32.xlu2 %v1084_v29, %s1545_s5 }
 0x324   :  { %v988_v40 = vpop.permute.xlu2 %987 }
 0x32c   :  { %v980_v39 = vpop.permute.xlu0 %979 }
 0x32d   :  { %v990_v47 = vsel %vm948_vm9, %v2152_v52, %v980_v39  ;;  %v1431_v52 = vld [vmem:[%s2247_s7 + $0x8] sm:$0xff] }
 0x334   :  { %v984_v37 = vpop.permute.xlu1 %983  ;;  %v1087_v44 = vpop.permute.xlu0 %1086 }
 0x335   :  { %v992_v41 = vsel %vm991_vm11, %v990_v47, %v984_v37 }
 0x336   :  { %v994_v42 = vsel %vm993_vm1, %v992_v41, %v988_v40 }
 0x337   :  { %v1097_v45 = vsel %vm1024_vm12, %v994_v42, %v1087_v44 }
 0x33c   :  { %v1091_v43 = vpop.permute.xlu1 %1090 }
 0x33d   :  { %v1099_v46 = vsel %vm1098_vm4, %v1097_v45, %v1091_v43 }
 0x373   :  { %v1095_v48 = vpop.permute.xlu2 %1094 }
 0x374   :  { %v1101_v49 = vsel %vm1100_vm5, %v1099_v46, %v1095_v48  ;;  %1258 = vst.msk [vmem:[%s2246_s9 + $0x8] sm:$0xff] %vm1031_vm15, %v1095_v48  ;;  %v1103_v51 = vpack.c.bf16 %v1095_v48, %v1095_v48 }
 0x375   :  { %v1102_v50 = vpack.c.bf16 %v1101_v49, %v1101_v49  ;;  %1257 = vst [vmem:[%s2246_s9] sm:$0xff] %v1101_v49 }
 0x377   :  { %1204 = vmatmul.bf16.vlgmr.msra.gmra.mxu3 %v1102_v50 }
 0x378   :  { %1250 = vmatpush.bf16.msra.mxu3 %v1431_v52 }
 0x37c   :  { %1251 = vmatpush.bf16.msra.mxu3 %v1430_v53 }
 0x387   :  { %1401 = vmatmul.msk.bf16.vlgmr.msrb.gmra.mxu3 %vm1031_vm15, %v1103_v51 }
 0x3fa   :  { %v1205_v54 = vpop.f32.mrf.mxu3 }
 0x3fb   :  { %v1206_v57 = vadd.f32 %v1205_v54, %v1126_v56 }
 0x402   :  { %v1207_v55 = vpop.f32.mrf.mxu3 }
 0x40a   :  { %v1218_v58 = vpop.f32.mrf.mxu3 }
 0x40b   :  { %v1219_v59 = vadd.f32 %v1218_v58, %v1206_v57 }
 0x40d   :  { %v1222_v60 = vmax.f32 %v1219_v59, 0.0 }
 0x40f   :  { %v1223_v61 = vpack.c.bf16 %v1222_v60, %v1222_v60 }
 0x411   :  { %1410 = vmatmul.msk.bf16.vlgmr.msra.gmra.mxu3 %vm1028_vm14, %v1223_v61 }
 0x412   :  { %v1220_v62 = vpop.f32.mrf.mxu3 }
 0x494   :  { %v1253_v9 = vpop.f32.mrf.mxu3 }
 0x495   :  { %v1254_v2 = vadd.f32 %v1253_v9, %v1228_v63 }
 0x497   :  { %1260 = vrot.lane.b32.xlu0 %v1254_v2, %s1542_s26 }
 0x49c   :  { %v1255_v4 = vpop.f32.mrf.mxu3 }
 0x509   :  { %v1261_v6 = vpop.permute.xlu0 %1260 }
 0x50a   :  { %1264 = vst.msk [vmem:[%s2246_s9 + $0x8] sm:$0xff] %vm1263_vm6, %v1261_v6 }

</bundles_post_ra>
